<compile_context>
chip_gen: v5e
topology: v5e:2x2
jax: 0.10.0
libtpu: 0.0.40
codegen_flags: <defaults>
</compile_context>

<pallas_src>
import functools

import jax
import jax.numpy as jnp
import numpy as np
from jax import lax
from jax.experimental import pallas as pl
from jax.experimental.pallas import tpu as pltpu


NEG_INF = -1e30   # finite sentinel instead of -inf (no NaN on degenerate rows)


# ----------------------------------------------------------------------------
# in-kernel helpers
# ----------------------------------------------------------------------------

def _mm(a, b):
    """(M, K) @ (K, N): bf16 operands, f32 accumulation on the MXU."""
    return lax.dot_general(
        a.astype(jnp.bfloat16), b.astype(jnp.bfloat16),
        dimension_numbers=(((a.ndim - 1,), (0,)), ((), ())),
        preferred_element_type=jnp.float32)


def _mm_nt(a, b):
    """(M, K) x (N, K) -> (M, N): contract last dims of both (no transpose)."""
    return lax.dot_general(
        a.astype(jnp.bfloat16), b.astype(jnp.bfloat16),
        dimension_numbers=(((1,), (1,)), ((), ())),
        preferred_element_type=jnp.float32)


def _softmax_lastdim(s):
    m = jnp.max(s, axis=-1, keepdims=True)
    p = jnp.exp(s - m)
    denom = jnp.sum(p, axis=-1, keepdims=True)
    return p * pl.reciprocal(denom, approx=True)   # EUP reciprocal, frees VALU


def _layernorm(z, g, b, eps=1e-5):
    mean = jnp.mean(z, axis=-1, keepdims=True)
    var = jnp.mean((z - mean) ** 2, axis=-1, keepdims=True)
    return (z - mean) * lax.rsqrt(var + eps) * g + b


def _mha_block(q_all, k_all, v_all, bias, wo, *, n_head, d_head):
    """Multi-head attention + output projection.

    q_all: (Lq, D) bf16, k_all/v_all: (Lk, D) bf16, bias: (Lq, Lk) additive or
    None, wo: (D, D).  The 1/sqrt(d_head) scale is already folded into q_all's
    projection weights.  Heads are statically unrolled (H small); head outputs
    are concatenated and projected with ONE (Lq, D) @ (D, D) matmul.
    """
    heads = []
    for h in range(n_head):
        sl = slice(h * d_head, (h + 1) * d_head)
        s = _mm_nt(q_all[:, sl], k_all[:, sl])          # (Lq, Lk) f32
        if bias is not None:
            s = s + bias
        p = _softmax_lastdim(s)
        heads.append(_mm(p, v_all[:, sl]).astype(jnp.bfloat16))   # (Lq, dh)
    o = jnp.concatenate(heads, axis=-1)                 # (Lq, D) bf16
    return _mm(o, wo)                                   # (Lq, D) f32


# ----------------------------------------------------------------------------
# fused decoder-layer kernel (one pallas_call per layer, grid = (B, L/Lq_tile))
# ----------------------------------------------------------------------------

def _decoder_layer_kernel(*refs, n_head, d_head, use_causal,
                          has_tgt_pad_bias, has_ctx_bias):
    it = iter(refs)
    tgt_q_ref = next(it)        # (1, Lq_tile, D)  query rows + residual
    tgt_kv_ref = next(it)       # (1, L, D)        self-attn keys/values source
    mem_ref = next(it)          # (1, Lm, D)
    tgt_pad_bias_ref = next(it) if has_tgt_pad_bias else None
    ctx_bias_ref = next(it) if has_ctx_bias else None
    w_self_q_ref = next(it)     # (D, D)   scale folded in
    w_self_kv_ref = next(it)    # (D, 2D)
    w_self_o_ref = next(it)     # (D, D)
    w_cross_q_ref = next(it)    # (D, D)   scale folded in
    w_cross_kv_ref = next(it)   # (D, 2D)
    w_cross_o_ref = next(it)    # (D, D)
    ffn_w1_ref = next(it)       # (D, F)
    ffn_w2_ref = next(it)       # (F, D)
    ln0_g_ref = next(it); ln0_b_ref = next(it)
    ln1_g_ref = next(it); ln1_b_ref = next(it)
    ln2_g_ref = next(it); ln2_b_ref = next(it)
    out_ref = next(it)          # (1, Lq_tile, D)

    D = n_head * d_head
    x_q = tgt_q_ref[0].astype(jnp.float32)     # (Lq, D) residual in f32
    x_kv = tgt_kv_ref[0]                        # (L, D)
    mem = mem_ref[0]                            # (Lm, D)
    Lq = x_q.shape[0]
    Lk = x_kv.shape[0]

    # ---- masked self-attention; causal bias generated in-kernel (VPU) ----
    if use_causal:
        q0 = pl.program_id(1) * Lq
        row = q0 + lax.broadcasted_iota(jnp.int32, (Lq, Lk), 0)
        col = lax.broadcasted_iota(jnp.int32, (Lq, Lk), 1)
        causal_bias = jnp.where(col > row, NEG_INF, 0.0)
    else:
        causal_bias = None

    q_all = _mm(x_q, w_self_q_ref[...]).astype(jnp.bfloat16)      # (Lq, D)
    kv_all = _mm(x_kv, w_self_kv_ref[...]).astype(jnp.bfloat16)   # (Lk, 2D)
    att = _mha_block(q_all, kv_all[:, :D], kv_all[:, D:], causal_bias,
                     w_self_o_ref[...], n_head=n_head, d_head=d_head)

    if has_tgt_pad_bias:
        # reference re-applies the SAME self-attention to the raw attention
        # output (pre-residual, pre-LN) with the pad mask.  Lq_tile == L here.
        att_bf = att.astype(jnp.bfloat16)
        q2 = _mm(att_bf, w_self_q_ref[...]).astype(jnp.bfloat16)
        kv2 = _mm(att_bf, w_self_kv_ref[...]).astype(jnp.bfloat16)
        att = _mha_block(q2, kv2[:, :D], kv2[:, D:], tgt_pad_bias_ref[...],
                         w_self_o_ref[...], n_head=n_head, d_head=d_head)

    sa = _layernorm(x_q + att, ln0_g_ref[...], ln0_b_ref[...])    # (Lq, D) f32

    # ---- cross-attention ----
    q_x = _mm(sa, w_cross_q_ref[...]).astype(jnp.bfloat16)        # (Lq, D)
    kv_x = _mm(mem, w_cross_kv_ref[...]).astype(jnp.bfloat16)     # (Lm, 2D)
    ctx_bias = ctx_bias_ref[...] if has_ctx_bias else None
    cross = _mha_block(q_x, kv_x[:, :D], kv_x[:, D:], ctx_bias,
                       w_cross_o_ref[...], n_head=n_head, d_head=d_head)
    ca = _layernorm(sa + cross, ln1_g_ref[...], ln1_b_ref[...])

    # ---- FFN + final residual/LN (dropout = identity in eval mode) ----
    h1 = jnp.maximum(_mm(ca, ffn_w1_ref[...]), 0.0).astype(jnp.bfloat16)
    f = _mm(h1, ffn_w2_ref[...])
    y = _layernorm(ca + f, ln2_g_ref[...], ln2_b_ref[...])
    out_ref[...] = y.astype(out_ref.dtype)[None]


def _rep_spec(shape):
    """BlockSpec for an array shared by every grid step (weights / masks).
    # TODO(synk): on v7x add pipeline_mode=pl.Buffered(1) (constant block
    # index -> single-buffering is lossless and halves weight VMEM)."""
    n = len(shape)
    return pl.BlockSpec(shape, lambda b, t, _n=n: (0,) * _n)


def _pick_lq_tile(length):
    if length <= 256:
        return length
    for t in (256, 128):
        if length % t == 0:
            return t
    return length


def decoder_layer_fused(params, tgt, memory, n_head, *, use_causal_mask,
                        tgt_pad_bias=None, ctx_bias=None,
                        out_dtype=jnp.float32):
    B, L, D = tgt.shape
    Lm = memory.shape[1]
    d_head = D // n_head
    has_pad = tgt_pad_bias is not None
    has_ctx = ctx_bias is not None

    lq_tile = _pick_lq_tile(L)
    if has_pad:
        lq_tile = L          # second self-attn needs every row in one step
    assert L % lq_tile == 0
    n_qt = L // lq_tile

    kern = functools.partial(
        _decoder_layer_kernel, n_head=n_head, d_head=d_head,
        use_causal=use_causal_mask,
        has_tgt_pad_bias=has_pad, has_ctx_bias=has_ctx)

    in_specs = [
        pl.BlockSpec((1, lq_tile, D), lambda b, t: (b, t, 0)),   # tgt query rows
        pl.BlockSpec((1, L, D), lambda b, t: (b, 0, 0)),         # tgt full (K/V)
        pl.BlockSpec((1, Lm, D), lambda b, t: (b, 0, 0)),        # memory
    ]
    args = [tgt, tgt, memory]
    if has_pad:                                   # only DMA'd when actually used
        in_specs.append(_rep_spec((L, L)))
        args.append(tgt_pad_bias)
    if has_ctx:
        in_specs.append(pl.BlockSpec((lq_tile, Lm), lambda b, t: (t, 0)))
        args.append(ctx_bias)

    weight_order = ("w_self_q", "w_self_kv", "w_self_o",
                    "w_cross_q", "w_cross_kv", "w_cross_o",
                    "ffn_w1", "ffn_w2",
                    "ln0_g", "ln0_b", "ln1_g", "ln1_b", "ln2_g", "ln2_b")
    for name in weight_order:
        w = params[name]
        in_specs.append(_rep_spec(w.shape))
        args.append(w)

    return pl.pallas_call(
        kern,
        out_shape=jax.ShapeDtypeStruct((B, L, D), out_dtype),
        grid=(B, n_qt),
        in_specs=in_specs,
        out_specs=pl.BlockSpec((1, lq_tile, D), lambda b, t: (b, t, 0)),
        compiler_params=pltpu.CompilerParams(
            dimension_semantics=("parallel", "parallel"),
            vmem_limit_bytes=64 * 1024 * 1024),
    )(*args)


def decoder_forward(fused_params_list, x, memory, n_head, *,
                    use_causal_mask=True, tgt_pad_bias=None, ctx_bias=None):
    mem_bf = memory.astype(jnp.bfloat16)       # halves the per-layer memory DMA
    out = x
    n_layer = len(fused_params_list)
    for i, p in enumerate(fused_params_list):
        # bf16 inter-layer activations (layer boundary is the only HBM
        # round-trip); final layer emits f32.
        out_dtype = jnp.float32 if i == n_layer - 1 else jnp.bfloat16
        out = decoder_layer_fused(p, out, mem_bf, n_head,
                                  use_causal_mask=use_causal_mask,
                                  tgt_pad_bias=tgt_pad_bias, ctx_bias=ctx_bias,
                                  out_dtype=out_dtype)
    # Reference PyTorch Decoder.forward returns `x`, not `out`.
    return x, out


# ----------------------------------------------------------------------------
# Pure-jnp f32 reference (verifies the Pallas compute path)
# ----------------------------------------------------------------------------

def _ref_mha(p, q_in, k_in, v_in, bias, n_head):
    B, Lq, D = q_in.shape
    Lk = k_in.shape[1]
    dh = D // n_head
    q = (q_in @ p["wq"]).reshape(B, Lq, n_head, dh).transpose(0, 2, 1, 3)
    k = (k_in @ p["wk"]).reshape(B, Lk, n_head, dh).transpose(0, 2, 1, 3)
    v = (v_in @ p["wv"]).reshape(B, Lk, n_head, dh).transpose(0, 2, 1, 3)
    s = jnp.einsum("bhqd,bhkd->bhqk", q, k) * (dh ** -0.5)
    if bias is not None:
        s = s + bias[None, None]
    a = jax.nn.softmax(s, axis=-1)
    o = jnp.einsum("bhqk,bhkd->bhqd", a, v).transpose(0, 2, 1, 3).reshape(B, Lq, D)
    return o @ p["wo"]


def _ref_ln(z, g, b):
    m = jnp.mean(z, axis=-1, keepdims=True)
    v = jnp.mean((z - m) ** 2, axis=-1, keepdims=True)
    return (z - m) * lax.rsqrt(v + 1e-5) * g + b


def _ref_layer(p, tgt, ctx, n_head, cb, xb):
    a = _ref_mha(p["self_attn"], tgt, tgt, tgt, cb, n_head)
    sa = _ref_ln(tgt + a, p["ln0_g"], p["ln0_b"])
    ca = _ref_ln(sa + _ref_mha(p["cross_attn"], sa, ctx, ctx, xb, n_head),
                 p["ln1_g"], p["ln1_b"])
    f = jnp.maximum(ca @ p["ffn_w1"], 0.0) @ p["ffn_w2"]
    return _ref_ln(ca + f, p["ln2_g"], p["ln2_b"])


# ----------------------------------------------------------------------------
# Parameter init (PyTorch-like layout) + fused/bf16/scale-folded prep
# ----------------------------------------------------------------------------

def init_mha_params(key, d_model):
    ks = jax.random.split(key, 4)
    s = 0.05
    return {n: jax.random.normal(k, (d_model, d_model), jnp.float32) * s
            for n, k in zip(("wq", "wk", "wv", "wo"), ks)}


def init_layer_params(key, d_model, d_ff):
    ks = jax.random.split(key, 4)
    s = 0.05
    return {
        "self_attn": init_mha_params(ks[0], d_model),
        "cross_attn": init_mha_params(ks[1], d_model),
        "ffn_w1": jax.random.normal(ks[2], (d_model, d_ff), jnp.float32) * s,
        "ffn_w2": jax.random.normal(ks[3], (d_ff, d_model), jnp.float32) * s,
        "ln0_g": jnp.ones((1, d_model), jnp.float32),
        "ln0_b": jnp.zeros((1, d_model), jnp.float32),
        "ln1_g": jnp.ones((1, d_model), jnp.float32),
        "ln1_b": jnp.zeros((1, d_model), jnp.float32),
        "ln2_g": jnp.ones((1, d_model), jnp.float32),
        "ln2_b": jnp.zeros((1, d_model), jnp.float32),
    }


def prep_fused_params(raw, n_head):
    """Fold 1/sqrt(d_head) into Q weights, concat K/V, pre-cast to bf16."""
    d_model = raw["self_attn"]["wq"].shape[0]
    scale = (d_model // n_head) ** (-0.5)
    sa, xa = raw["self_attn"], raw["cross_attn"]
    bf = lambda w: w.astype(jnp.bfloat16)
    return {
        "w_self_q": bf(sa["wq"] * scale),
        "w_self_kv": bf(jnp.concatenate([sa["wk"], sa["wv"]], axis=1)),
        "w_self_o": bf(sa["wo"]),
        "w_cross_q": bf(xa["wq"] * scale),
        "w_cross_kv": bf(jnp.concatenate([xa["wk"], xa["wv"]], axis=1)),
        "w_cross_o": bf(xa["wo"]),
        "ffn_w1": bf(raw["ffn_w1"]),
        "ffn_w2": bf(raw["ffn_w2"]),
        "ln0_g": raw["ln0_g"], "ln0_b": raw["ln0_b"],
        "ln1_g": raw["ln1_g"], "ln1_b": raw["ln1_b"],
        "ln2_g": raw["ln2_g"], "ln2_b": raw["ln2_b"],
    }


# ----------------------------------------------------------------------------
# Main
# ----------------------------------------------------------------------------

if __name__ == "__main__":
    d_model, n_head, d_ff, n_layer = 32, 4, 64, 2
    batch, tgt_len, mem_len = 2, 8, 8

    key = jax.random.PRNGKey(0)
    k_x, k_m, k_p = jax.random.split(key, 3)
    x = jax.random.normal(k_x, (batch, tgt_len, d_model), jnp.float32)
    memory = jax.random.normal(k_m, (batch, mem_len, d_model), jnp.float32)

    layer_keys = jax.random.split(k_p, n_layer)
    raw_params = [init_layer_params(layer_keys[i], d_model, d_ff)
                  for i in range(n_layer)]
    fused_params = [prep_fused_params(p, n_head) for p in raw_params]

    # causal mask + no pad masks (reference defaults); the kernel generates the
    # causal bias internally, so nothing mask-shaped is passed to pallas_call.
    ret, stack_out = decoder_forward(fused_params, x, memory, n_head,
                                     use_causal_mask=True,
                                     tgt_pad_bias=None, ctx_bias=None)
    ret = jax.block_until_ready(ret)
    stack_out = jax.block_until_ready(stack_out)

    # Verify the Pallas compute path against a pure-jnp f32 reference.
    i_idx = jnp.arange(tgt_len)[:, None]
    j_idx = jnp.arange(tgt_len)[None, :]
    causal_bias = jnp.where(j_idx > i_idx, NEG_INF, 0.0).astype(jnp.float32)
    ref = x
    for p in raw_params:
        ref = _ref_layer(p, ref, memory, n_head, causal_bias, None)
    # bf16 matmul operands + bf16 inter-layer activations + approx reciprocal
    # -> relaxed tolerance vs the pure-f32 reference.
    err = float(np.max(np.abs(np.asarray(stack_out) - np.asarray(ref))))
    assert err < 1e-1, f"layer-stack mismatch vs jnp reference (max abs err {err})"
    # Reference Decoder.forward returns its input `x` unchanged.
    assert np.allclose(np.asarray(ret), np.asarray(x)), "Decoder must return x"

    print("KERNEL_OK")
</pallas_src>

<mosaic_0001>
module attributes {stable_mosaic.version = 11 : i64} {
  func.func @_decoder_layer_kernel(%arg0: i32, %arg1: i32, %arg2: memref<1x8x32xf32, #tpu.memory_space<vmem>>, %arg3: memref<1x8x32xf32, #tpu.memory_space<vmem>>, %arg4: memref<1x8x32xbf16, #tpu.memory_space<vmem>>, %arg5: memref<32x32xbf16, #tpu.memory_space<vmem>>, %arg6: memref<32x64xbf16, #tpu.memory_space<vmem>>, %arg7: memref<32x32xbf16, #tpu.memory_space<vmem>>, %arg8: memref<32x32xbf16, #tpu.memory_space<vmem>>, %arg9: memref<32x64xbf16, #tpu.memory_space<vmem>>, %arg10: memref<32x32xbf16, #tpu.memory_space<vmem>>, %arg11: memref<32x64xbf16, #tpu.memory_space<vmem>>, %arg12: memref<64x32xbf16, #tpu.memory_space<vmem>>, %arg13: memref<1x32xf32, #tpu.memory_space<vmem>>, %arg14: memref<1x32xf32, #tpu.memory_space<vmem>>, %arg15: memref<1x32xf32, #tpu.memory_space<vmem>>, %arg16: memref<1x32xf32, #tpu.memory_space<vmem>>, %arg17: memref<1x32xf32, #tpu.memory_space<vmem>>, %arg18: memref<1x32xf32, #tpu.memory_space<vmem>>, %arg19: memref<1x8x32xbf16, #tpu.memory_space<vmem>>) attributes {dimension_semantics = [#tpu.dimension_semantics<parallel>, #tpu.dimension_semantics<parallel>], iteration_bounds = array<i64: 2, 1>, scalar_prefetch = 0 : i64, scratch_operands = 0 : i64, tpu.core_type = #tpu.core_type<tc>, window_params = [{transform_indices = @transform_0, window_bounds = array<i64: 1, 8, 32>}, {transform_indices = @transform_1, window_bounds = array<i64: 1, 8, 32>}, {transform_indices = @transform_2, window_bounds = array<i64: 1, 8, 32>}, {pipeline_mode = #tpu.pipeline_mode<synchronous>, transform_indices = @transform_3, window_bounds = array<i64: 32, 32>}, {pipeline_mode = #tpu.pipeline_mode<synchronous>, transform_indices = @transform_4, window_bounds = array<i64: 32, 64>}, {pipeline_mode = #tpu.pipeline_mode<synchronous>, transform_indices = @transform_5, window_bounds = array<i64: 32, 32>}, {pipeline_mode = #tpu.pipeline_mode<synchronous>, transform_indices = @transform_6, window_bounds = array<i64: 32, 32>}, {pipeline_mode = #tpu.pipeline_mode<synchronous>, transform_indices = @transform_7, window_bounds = array<i64: 32, 64>}, {pipeline_mode = #tpu.pipeline_mode<synchronous>, transform_indices = @transform_8, window_bounds = array<i64: 32, 32>}, {pipeline_mode = #tpu.pipeline_mode<synchronous>, transform_indices = @transform_9, window_bounds = array<i64: 32, 64>}, {pipeline_mode = #tpu.pipeline_mode<synchronous>, transform_indices = @transform_10, window_bounds = array<i64: 64, 32>}, {pipeline_mode = #tpu.pipeline_mode<synchronous>, transform_indices = @transform_11, window_bounds = array<i64: 1, 32>}, {pipeline_mode = #tpu.pipeline_mode<synchronous>, transform_indices = @transform_12, window_bounds = array<i64: 1, 32>}, {pipeline_mode = #tpu.pipeline_mode<synchronous>, transform_indices = @transform_13, window_bounds = array<i64: 1, 32>}, {pipeline_mode = #tpu.pipeline_mode<synchronous>, transform_indices = @transform_14, window_bounds = array<i64: 1, 32>}, {pipeline_mode = #tpu.pipeline_mode<synchronous>, transform_indices = @transform_15, window_bounds = array<i64: 1, 32>}, {pipeline_mode = #tpu.pipeline_mode<synchronous>, transform_indices = @transform_16, window_bounds = array<i64: 1, 32>}, {transform_indices = @transform_17, window_bounds = array<i64: 1, 8, 32>}]} {
    %c0 = arith.constant 0 : index
    %c0_0 = arith.constant 0 : index
    %c0_1 = arith.constant 0 : index
    %0 = vector.load %arg2[%c0, %c0_0, %c0_1] : memref<1x8x32xf32, #tpu.memory_space<vmem>>, vector<1x8x32xf32>
    %1 = vector.shape_cast %0 : vector<1x8x32xf32> to vector<8x32xf32>
    %c0_2 = arith.constant 0 : index
    %c0_3 = arith.constant 0 : index
    %c0_4 = arith.constant 0 : index
    %2 = vector.load %arg3[%c0_2, %c0_3, %c0_4] : memref<1x8x32xf32, #tpu.memory_space<vmem>>, vector<1x8x32xf32>
    %3 = vector.shape_cast %2 : vector<1x8x32xf32> to vector<8x32xf32>
    %c0_5 = arith.constant 0 : index
    %c0_6 = arith.constant 0 : index
    %c0_7 = arith.constant 0 : index
    %4 = vector.load %arg4[%c0_5, %c0_6, %c0_7] : memref<1x8x32xbf16, #tpu.memory_space<vmem>>, vector<1x8x32xbf16>
    %5 = vector.shape_cast %4 : vector<1x8x32xbf16> to vector<8x32xbf16>
    %c8_i32 = arith.constant 8 : i32
    %6 = arith.muli %arg1, %c8_i32 : i32
    %7 = tpu.iota {dimensions = array<i32: 0>} : vector<8x8xi32>
    %8 = vector.broadcast %6 : i32 to vector<8x8xi32>
    %9 = arith.addi %8, %7 : vector<8x8xi32>
    %10 = tpu.iota {dimensions = array<i32: 1>} : vector<8x8xi32>
    %11 = arith.cmpi sgt, %10, %9 : vector<8x8xi32>
    %cst = arith.constant -1.000000e+30 : f32
    %cst_8 = arith.constant 0.000000e+00 : f32
    %12 = vector.broadcast %cst : f32 to vector<8x8xf32>
    %13 = vector.broadcast %cst_8 : f32 to vector<8x8xf32>
    %14 = arith.select %11, %12, %13 : vector<8x8xi1>, vector<8x8xf32>
    %c0_9 = arith.constant 0 : index
    %c0_10 = arith.constant 0 : index
    %15 = vector.load %arg5[%c0_9, %c0_10] : memref<32x32xbf16, #tpu.memory_space<vmem>>, vector<32x32xbf16>
    %16 = arith.truncf %1 : vector<8x32xf32> to vector<8x32xbf16>
    %cst_11 = arith.constant dense<0.000000e+00> : vector<8x32xf32>
    %17 = tpu.matmul %16, %15, %cst_11 {dimension_numbers = #tpu.dot_dimension_numbers<[1], [0], [0], [1], [0, 0, 1, 1], [], []>} : vector<8x32xbf16>, vector<32x32xbf16>, vector<8x32xf32> -> vector<8x32xf32>
    %18 = arith.truncf %17 : vector<8x32xf32> to vector<8x32xbf16>
    %c0_12 = arith.constant 0 : index
    %c0_13 = arith.constant 0 : index
    %19 = vector.load %arg6[%c0_12, %c0_13] : memref<32x64xbf16, #tpu.memory_space<vmem>>, vector<32x64xbf16>
    %20 = arith.truncf %3 : vector<8x32xf32> to vector<8x32xbf16>
    %cst_14 = arith.constant dense<0.000000e+00> : vector<8x64xf32>
    %21 = tpu.matmul %20, %19, %cst_14 {dimension_numbers = #tpu.dot_dimension_numbers<[1], [0], [0], [1], [0, 0, 1, 1], [], []>} : vector<8x32xbf16>, vector<32x64xbf16>, vector<8x64xf32> -> vector<8x64xf32>
    %22 = arith.truncf %21 : vector<8x64xf32> to vector<8x64xbf16>
    %23 = vector.extract_strided_slice %22 {offsets = [0, 0], sizes = [8, 32], strides = [1, 1]} : vector<8x64xbf16> to vector<8x32xbf16>
    %24 = vector.extract_strided_slice %22 {offsets = [0, 32], sizes = [8, 32], strides = [1, 1]} : vector<8x64xbf16> to vector<8x32xbf16>
    %c0_15 = arith.constant 0 : index
    %c0_16 = arith.constant 0 : index
    %25 = vector.load %arg7[%c0_15, %c0_16] : memref<32x32xbf16, #tpu.memory_space<vmem>>, vector<32x32xbf16>
    %26 = vector.extract_strided_slice %18 {offsets = [0, 0], sizes = [8, 8], strides = [1, 1]} : vector<8x32xbf16> to vector<8x8xbf16>
    %27 = vector.extract_strided_slice %23 {offsets = [0, 0], sizes = [8, 8], strides = [1, 1]} : vector<8x32xbf16> to vector<8x8xbf16>
    %cst_17 = arith.constant dense<0.000000e+00> : vector<8x8xf32>
    %28 = tpu.matmul %26, %27, %cst_17 {dimension_numbers = #tpu.dot_dimension_numbers<[1], [1], [0], [0], [0, 0, 1, 0], [], []>} : vector<8x8xbf16>, vector<8x8xbf16>, vector<8x8xf32> -> vector<8x8xf32>
    %29 = arith.addf %28, %14 : vector<8x8xf32>
    %cst_18 = arith.constant dense<0xFF800000> : vector<8xf32>
    %30 = vector.multi_reduction <maximumf>, %29, %cst_18 [1] : vector<8x8xf32> to vector<8xf32>
    %31 = vector.shape_cast %30 : vector<8xf32> to vector<8x1xf32>
    %32 = vector.broadcast %31 : vector<8x1xf32> to vector<8x8xf32>
    %33 = arith.subf %29, %32 : vector<8x8xf32>
    %34 = math.exp %33 : vector<8x8xf32>
    %cst_19 = arith.constant dense<0.000000e+00> : vector<8xf32>
    %35 = vector.multi_reduction <add>, %34, %cst_19 [1] : vector<8x8xf32> to vector<8xf32>
    %36 = vector.shape_cast %35 : vector<8xf32> to vector<8x1xf32>
    %37 = tpu.reciprocal %36 {approx = true} : vector<8x1xf32> -> vector<8x1xf32>
    %38 = vector.broadcast %37 : vector<8x1xf32> to vector<8x8xf32>
    %39 = arith.mulf %34, %38 : vector<8x8xf32>
    %40 = vector.extract_strided_slice %24 {offsets = [0, 0], sizes = [8, 8], strides = [1, 1]} : vector<8x32xbf16> to vector<8x8xbf16>
    %41 = arith.truncf %39 : vector<8x8xf32> to vector<8x8xbf16>
    %cst_20 = arith.constant dense<0.000000e+00> : vector<8x8xf32>
    %42 = tpu.matmul %41, %40, %cst_20 {dimension_numbers = #tpu.dot_dimension_numbers<[1], [0], [0], [1], [0, 0, 1, 1], [], []>} : vector<8x8xbf16>, vector<8x8xbf16>, vector<8x8xf32> -> vector<8x8xf32>
    %43 = arith.truncf %42 : vector<8x8xf32> to vector<8x8xbf16>
    %44 = vector.extract_strided_slice %18 {offsets = [0, 8], sizes = [8, 8], strides = [1, 1]} : vector<8x32xbf16> to vector<8x8xbf16>
    %45 = vector.extract_strided_slice %23 {offsets = [0, 8], sizes = [8, 8], strides = [1, 1]} : vector<8x32xbf16> to vector<8x8xbf16>
    %cst_21 = arith.constant dense<0.000000e+00> : vector<8x8xf32>
    %46 = tpu.matmul %44, %45, %cst_21 {dimension_numbers = #tpu.dot_dimension_numbers<[1], [1], [0], [0], [0, 0, 1, 0], [], []>} : vector<8x8xbf16>, vector<8x8xbf16>, vector<8x8xf32> -> vector<8x8xf32>
    %47 = arith.addf %46, %14 : vector<8x8xf32>
    %cst_22 = arith.constant dense<0xFF800000> : vector<8xf32>
    %48 = vector.multi_reduction <maximumf>, %47, %cst_22 [1] : vector<8x8xf32> to vector<8xf32>
    %49 = vector.shape_cast %48 : vector<8xf32> to vector<8x1xf32>
    %50 = vector.broadcast %49 : vector<8x1xf32> to vector<8x8xf32>
    %51 = arith.subf %47, %50 : vector<8x8xf32>
    %52 = math.exp %51 : vector<8x8xf32>
    %cst_23 = arith.constant dense<0.000000e+00> : vector<8xf32>
    %53 = vector.multi_reduction <add>, %52, %cst_23 [1] : vector<8x8xf32> to vector<8xf32>
    %54 = vector.shape_cast %53 : vector<8xf32> to vector<8x1xf32>
    %55 = tpu.reciprocal %54 {approx = true} : vector<8x1xf32> -> vector<8x1xf32>
    %56 = vector.broadcast %55 : vector<8x1xf32> to vector<8x8xf32>
    %57 = arith.mulf %52, %56 : vector<8x8xf32>
    %58 = vector.extract_strided_slice %24 {offsets = [0, 8], sizes = [8, 8], strides = [1, 1]} : vector<8x32xbf16> to vector<8x8xbf16>
    %59 = arith.truncf %57 : vector<8x8xf32> to vector<8x8xbf16>
    %cst_24 = arith.constant dense<0.000000e+00> : vector<8x8xf32>
    %60 = tpu.matmul %59, %58, %cst_24 {dimension_numbers = #tpu.dot_dimension_numbers<[1], [0], [0], [1], [0, 0, 1, 1], [], []>} : vector<8x8xbf16>, vector<8x8xbf16>, vector<8x8xf32> -> vector<8x8xf32>
    %61 = arith.truncf %60 : vector<8x8xf32> to vector<8x8xbf16>
    %62 = vector.extract_strided_slice %18 {offsets = [0, 16], sizes = [8, 8], strides = [1, 1]} : vector<8x32xbf16> to vector<8x8xbf16>
    %63 = vector.extract_strided_slice %23 {offsets = [0, 16], sizes = [8, 8], strides = [1, 1]} : vector<8x32xbf16> to vector<8x8xbf16>
    %cst_25 = arith.constant dense<0.000000e+00> : vector<8x8xf32>
    %64 = tpu.matmul %62, %63, %cst_25 {dimension_numbers = #tpu.dot_dimension_numbers<[1], [1], [0], [0], [0, 0, 1, 0], [], []>} : vector<8x8xbf16>, vector<8x8xbf16>, vector<8x8xf32> -> vector<8x8xf32>
    %65 = arith.addf %64, %14 : vector<8x8xf32>
    %cst_26 = arith.constant dense<0xFF800000> : vector<8xf32>
    %66 = vector.multi_reduction <maximumf>, %65, %cst_26 [1] : vector<8x8xf32> to vector<8xf32>
    %67 = vector.shape_cast %66 : vector<8xf32> to vector<8x1xf32>
    %68 = vector.broadcast %67 : vector<8x1xf32> to vector<8x8xf32>
    %69 = arith.subf %65, %68 : vector<8x8xf32>
    %70 = math.exp %69 : vector<8x8xf32>
    %cst_27 = arith.constant dense<0.000000e+00> : vector<8xf32>
    %71 = vector.multi_reduction <add>, %70, %cst_27 [1] : vector<8x8xf32> to vector<8xf32>
    %72 = vector.shape_cast %71 : vector<8xf32> to vector<8x1xf32>
    %73 = tpu.reciprocal %72 {approx = true} : vector<8x1xf32> -> vector<8x1xf32>
    %74 = vector.broadcast %73 : vector<8x1xf32> to vector<8x8xf32>
    %75 = arith.mulf %70, %74 : vector<8x8xf32>
    %76 = vector.extract_strided_slice %24 {offsets = [0, 16], sizes = [8, 8], strides = [1, 1]} : vector<8x32xbf16> to vector<8x8xbf16>
    %77 = arith.truncf %75 : vector<8x8xf32> to vector<8x8xbf16>
    %cst_28 = arith.constant dense<0.000000e+00> : vector<8x8xf32>
    %78 = tpu.matmul %77, %76, %cst_28 {dimension_numbers = #tpu.dot_dimension_numbers<[1], [0], [0], [1], [0, 0, 1, 1], [], []>} : vector<8x8xbf16>, vector<8x8xbf16>, vector<8x8xf32> -> vector<8x8xf32>
    %79 = arith.truncf %78 : vector<8x8xf32> to vector<8x8xbf16>
    %80 = vector.extract_strided_slice %18 {offsets = [0, 24], sizes = [8, 8], strides = [1, 1]} : vector<8x32xbf16> to vector<8x8xbf16>
    %81 = vector.extract_strided_slice %23 {offsets = [0, 24], sizes = [8, 8], strides = [1, 1]} : vector<8x32xbf16> to vector<8x8xbf16>
    %cst_29 = arith.constant dense<0.000000e+00> : vector<8x8xf32>
    %82 = tpu.matmul %80, %81, %cst_29 {dimension_numbers = #tpu.dot_dimension_numbers<[1], [1], [0], [0], [0, 0, 1, 0], [], []>} : vector<8x8xbf16>, vector<8x8xbf16>, vector<8x8xf32> -> vector<8x8xf32>
    %83 = arith.addf %82, %14 : vector<8x8xf32>
    %cst_30 = arith.constant dense<0xFF800000> : vector<8xf32>
    %84 = vector.multi_reduction <maximumf>, %83, %cst_30 [1] : vector<8x8xf32> to vector<8xf32>
    %85 = vector.shape_cast %84 : vector<8xf32> to vector<8x1xf32>
    %86 = vector.broadcast %85 : vector<8x1xf32> to vector<8x8xf32>
    %87 = arith.subf %83, %86 : vector<8x8xf32>
    %88 = math.exp %87 : vector<8x8xf32>
    %cst_31 = arith.constant dense<0.000000e+00> : vector<8xf32>
    %89 = vector.multi_reduction <add>, %88, %cst_31 [1] : vector<8x8xf32> to vector<8xf32>
    %90 = vector.shape_cast %89 : vector<8xf32> to vector<8x1xf32>
    %91 = tpu.reciprocal %90 {approx = true} : vector<8x1xf32> -> vector<8x1xf32>
    %92 = vector.broadcast %91 : vector<8x1xf32> to vector<8x8xf32>
    %93 = arith.mulf %88, %92 : vector<8x8xf32>
    %94 = vector.extract_strided_slice %24 {offsets = [0, 24], sizes = [8, 8], strides = [1, 1]} : vector<8x32xbf16> to vector<8x8xbf16>
    %95 = arith.truncf %93 : vector<8x8xf32> to vector<8x8xbf16>
    %cst_32 = arith.constant dense<0.000000e+00> : vector<8x8xf32>
    %96 = tpu.matmul %95, %94, %cst_32 {dimension_numbers = #tpu.dot_dimension_numbers<[1], [0], [0], [1], [0, 0, 1, 1], [], []>} : vector<8x8xbf16>, vector<8x8xbf16>, vector<8x8xf32> -> vector<8x8xf32>
    %97 = arith.truncf %96 : vector<8x8xf32> to vector<8x8xbf16>
    %98 = tpu.concatenate %43, %61, %79, %97 in 1 : vector<8x8xbf16>, vector<8x8xbf16>, vector<8x8xbf16>, vector<8x8xbf16> -> vector<8x32xbf16>
    %cst_33 = arith.constant dense<0.000000e+00> : vector<8x32xf32>
    %99 = tpu.matmul %98, %25, %cst_33 {dimension_numbers = #tpu.dot_dimension_numbers<[1], [0], [0], [1], [0, 0, 1, 1], [], []>} : vector<8x32xbf16>, vector<32x32xbf16>, vector<8x32xf32> -> vector<8x32xf32>
    %100 = arith.addf %1, %99 : vector<8x32xf32>
    %c0_34 = arith.constant 0 : index
    %c0_35 = arith.constant 0 : index
    %101 = vector.load %arg13[%c0_34, %c0_35] : memref<1x32xf32, #tpu.memory_space<vmem>>, vector<1x32xf32>
    %c0_36 = arith.constant 0 : index
    %c0_37 = arith.constant 0 : index
    %102 = vector.load %arg14[%c0_36, %c0_37] : memref<1x32xf32, #tpu.memory_space<vmem>>, vector<1x32xf32>
    %cst_38 = arith.constant dense<0.000000e+00> : vector<8xf32>
    %103 = vector.multi_reduction <add>, %100, %cst_38 [1] : vector<8x32xf32> to vector<8xf32>
    %104 = vector.shape_cast %103 : vector<8xf32> to vector<8x1xf32>
    %cst_39 = arith.constant 3.200000e+01 : f32
    %105 = vector.broadcast %cst_39 : f32 to vector<8x1xf32>
    %106 = arith.divf %104, %105 : vector<8x1xf32>
    %107 = vector.broadcast %106 : vector<8x1xf32> to vector<8x32xf32>
    %108 = arith.subf %100, %107 : vector<8x32xf32>
    %109 = arith.mulf %108, %108 : vector<8x32xf32>
    %cst_40 = arith.constant dense<0.000000e+00> : vector<8xf32>
    %110 = vector.multi_reduction <add>, %109, %cst_40 [1] : vector<8x32xf32> to vector<8xf32>
    %111 = vector.shape_cast %110 : vector<8xf32> to vector<8x1xf32>
    %cst_41 = arith.constant 3.200000e+01 : f32
    %112 = vector.broadcast %cst_41 : f32 to vector<8x1xf32>
    %113 = arith.divf %111, %112 : vector<8x1xf32>
    %114 = vector.broadcast %106 : vector<8x1xf32> to vector<8x32xf32>
    %115 = arith.subf %100, %114 : vector<8x32xf32>
    %cst_42 = arith.constant 9.99999974E-6 : f32
    %116 = vector.broadcast %cst_42 : f32 to vector<8x1xf32>
    %117 = arith.addf %113, %116 : vector<8x1xf32>
    %118 = math.rsqrt %117 : vector<8x1xf32>
    %119 = vector.broadcast %118 : vector<8x1xf32> to vector<8x32xf32>
    %120 = arith.mulf %115, %119 : vector<8x32xf32>
    %121 = vector.broadcast %101 : vector<1x32xf32> to vector<8x32xf32>
    %122 = arith.mulf %120, %121 : vector<8x32xf32>
    %123 = vector.broadcast %102 : vector<1x32xf32> to vector<8x32xf32>
    %124 = arith.addf %122, %123 : vector<8x32xf32>
    %c0_43 = arith.constant 0 : index
    %c0_44 = arith.constant 0 : index
    %125 = vector.load %arg8[%c0_43, %c0_44] : memref<32x32xbf16, #tpu.memory_space<vmem>>, vector<32x32xbf16>
    %126 = arith.truncf %124 : vector<8x32xf32> to vector<8x32xbf16>
    %cst_45 = arith.constant dense<0.000000e+00> : vector<8x32xf32>
    %127 = tpu.matmul %126, %125, %cst_45 {dimension_numbers = #tpu.dot_dimension_numbers<[1], [0], [0], [1], [0, 0, 1, 1], [], []>} : vector<8x32xbf16>, vector<32x32xbf16>, vector<8x32xf32> -> vector<8x32xf32>
    %128 = arith.truncf %127 : vector<8x32xf32> to vector<8x32xbf16>
    %c0_46 = arith.constant 0 : index
    %c0_47 = arith.constant 0 : index
    %129 = vector.load %arg9[%c0_46, %c0_47] : memref<32x64xbf16, #tpu.memory_space<vmem>>, vector<32x64xbf16>
    %cst_48 = arith.constant dense<0.000000e+00> : vector<8x64xf32>
    %130 = tpu.matmul %5, %129, %cst_48 {dimension_numbers = #tpu.dot_dimension_numbers<[1], [0], [0], [1], [0, 0, 1, 1], [], []>} : vector<8x32xbf16>, vector<32x64xbf16>, vector<8x64xf32> -> vector<8x64xf32>
    %131 = arith.truncf %130 : vector<8x64xf32> to vector<8x64xbf16>
    %132 = vector.extract_strided_slice %131 {offsets = [0, 0], sizes = [8, 32], strides = [1, 1]} : vector<8x64xbf16> to vector<8x32xbf16>
    %133 = vector.extract_strided_slice %131 {offsets = [0, 32], sizes = [8, 32], strides = [1, 1]} : vector<8x64xbf16> to vector<8x32xbf16>
    %c0_49 = arith.constant 0 : index
    %c0_50 = arith.constant 0 : index
    %134 = vector.load %arg10[%c0_49, %c0_50] : memref<32x32xbf16, #tpu.memory_space<vmem>>, vector<32x32xbf16>
    %135 = vector.extract_strided_slice %128 {offsets = [0, 0], sizes = [8, 8], strides = [1, 1]} : vector<8x32xbf16> to vector<8x8xbf16>
    %136 = vector.extract_strided_slice %132 {offsets = [0, 0], sizes = [8, 8], strides = [1, 1]} : vector<8x32xbf16> to vector<8x8xbf16>
    %cst_51 = arith.constant dense<0.000000e+00> : vector<8x8xf32>
    %137 = tpu.matmul %135, %136, %cst_51 {dimension_numbers = #tpu.dot_dimension_numbers<[1], [1], [0], [0], [0, 0, 1, 0], [], []>} : vector<8x8xbf16>, vector<8x8xbf16>, vector<8x8xf32> -> vector<8x8xf32>
    %cst_52 = arith.constant dense<0xFF800000> : vector<8xf32>
    %138 = vector.multi_reduction <maximumf>, %137, %cst_52 [1] : vector<8x8xf32> to vector<8xf32>
    %139 = vector.shape_cast %138 : vector<8xf32> to vector<8x1xf32>
    %140 = vector.broadcast %139 : vector<8x1xf32> to vector<8x8xf32>
    %141 = arith.subf %137, %140 : vector<8x8xf32>
    %142 = math.exp %141 : vector<8x8xf32>
    %cst_53 = arith.constant dense<0.000000e+00> : vector<8xf32>
    %143 = vector.multi_reduction <add>, %142, %cst_53 [1] : vector<8x8xf32> to vector<8xf32>
    %144 = vector.shape_cast %143 : vector<8xf32> to vector<8x1xf32>
    %145 = tpu.reciprocal %144 {approx = true} : vector<8x1xf32> -> vector<8x1xf32>
    %146 = vector.broadcast %145 : vector<8x1xf32> to vector<8x8xf32>
    %147 = arith.mulf %142, %146 : vector<8x8xf32>
    %148 = vector.extract_strided_slice %133 {offsets = [0, 0], sizes = [8, 8], strides = [1, 1]} : vector<8x32xbf16> to vector<8x8xbf16>
    %149 = arith.truncf %147 : vector<8x8xf32> to vector<8x8xbf16>
    %cst_54 = arith.constant dense<0.000000e+00> : vector<8x8xf32>
    %150 = tpu.matmul %149, %148, %cst_54 {dimension_numbers = #tpu.dot_dimension_numbers<[1], [0], [0], [1], [0, 0, 1, 1], [], []>} : vector<8x8xbf16>, vector<8x8xbf16>, vector<8x8xf32> -> vector<8x8xf32>
    %151 = arith.truncf %150 : vector<8x8xf32> to vector<8x8xbf16>
    %152 = vector.extract_strided_slice %128 {offsets = [0, 8], sizes = [8, 8], strides = [1, 1]} : vector<8x32xbf16> to vector<8x8xbf16>
    %153 = vector.extract_strided_slice %132 {offsets = [0, 8], sizes = [8, 8], strides = [1, 1]} : vector<8x32xbf16> to vector<8x8xbf16>
    %cst_55 = arith.constant dense<0.000000e+00> : vector<8x8xf32>
    %154 = tpu.matmul %152, %153, %cst_55 {dimension_numbers = #tpu.dot_dimension_numbers<[1], [1], [0], [0], [0, 0, 1, 0], [], []>} : vector<8x8xbf16>, vector<8x8xbf16>, vector<8x8xf32> -> vector<8x8xf32>
    %cst_56 = arith.constant dense<0xFF800000> : vector<8xf32>
    %155 = vector.multi_reduction <maximumf>, %154, %cst_56 [1] : vector<8x8xf32> to vector<8xf32>
    %156 = vector.shape_cast %155 : vector<8xf32> to vector<8x1xf32>
    %157 = vector.broadcast %156 : vector<8x1xf32> to vector<8x8xf32>
    %158 = arith.subf %154, %157 : vector<8x8xf32>
    %159 = math.exp %158 : vector<8x8xf32>
    %cst_57 = arith.constant dense<0.000000e+00> : vector<8xf32>
    %160 = vector.multi_reduction <add>, %159, %cst_57 [1] : vector<8x8xf32> to vector<8xf32>
    %161 = vector.shape_cast %160 : vector<8xf32> to vector<8x1xf32>
    %162 = tpu.reciprocal %161 {approx = true} : vector<8x1xf32> -> vector<8x1xf32>
    %163 = vector.broadcast %162 : vector<8x1xf32> to vector<8x8xf32>
    %164 = arith.mulf %159, %163 : vector<8x8xf32>
    %165 = vector.extract_strided_slice %133 {offsets = [0, 8], sizes = [8, 8], strides = [1, 1]} : vector<8x32xbf16> to vector<8x8xbf16>
    %166 = arith.truncf %164 : vector<8x8xf32> to vector<8x8xbf16>
    %cst_58 = arith.constant dense<0.000000e+00> : vector<8x8xf32>
    %167 = tpu.matmul %166, %165, %cst_58 {dimension_numbers = #tpu.dot_dimension_numbers<[1], [0], [0], [1], [0, 0, 1, 1], [], []>} : vector<8x8xbf16>, vector<8x8xbf16>, vector<8x8xf32> -> vector<8x8xf32>
    %168 = arith.truncf %167 : vector<8x8xf32> to vector<8x8xbf16>
    %169 = vector.extract_strided_slice %128 {offsets = [0, 16], sizes = [8, 8], strides = [1, 1]} : vector<8x32xbf16> to vector<8x8xbf16>
    %170 = vector.extract_strided_slice %132 {offsets = [0, 16], sizes = [8, 8], strides = [1, 1]} : vector<8x32xbf16> to vector<8x8xbf16>
    %cst_59 = arith.constant dense<0.000000e+00> : vector<8x8xf32>
    %171 = tpu.matmul %169, %170, %cst_59 {dimension_numbers = #tpu.dot_dimension_numbers<[1], [1], [0], [0], [0, 0, 1, 0], [], []>} : vector<8x8xbf16>, vector<8x8xbf16>, vector<8x8xf32> -> vector<8x8xf32>
    %cst_60 = arith.constant dense<0xFF800000> : vector<8xf32>
    %172 = vector.multi_reduction <maximumf>, %171, %cst_60 [1] : vector<8x8xf32> to vector<8xf32>
    %173 = vector.shape_cast %172 : vector<8xf32> to vector<8x1xf32>
    %174 = vector.broadcast %173 : vector<8x1xf32> to vector<8x8xf32>
    %175 = arith.subf %171, %174 : vector<8x8xf32>
    %176 = math.exp %175 : vector<8x8xf32>
    %cst_61 = arith.constant dense<0.000000e+00> : vector<8xf32>
    %177 = vector.multi_reduction <add>, %176, %cst_61 [1] : vector<8x8xf32> to vector<8xf32>
    %178 = vector.shape_cast %177 : vector<8xf32> to vector<8x1xf32>
    %179 = tpu.reciprocal %178 {approx = true} : vector<8x1xf32> -> vector<8x1xf32>
    %180 = vector.broadcast %179 : vector<8x1xf32> to vector<8x8xf32>
    %181 = arith.mulf %176, %180 : vector<8x8xf32>
    %182 = vector.extract_strided_slice %133 {offsets = [0, 16], sizes = [8, 8], strides = [1, 1]} : vector<8x32xbf16> to vector<8x8xbf16>
    %183 = arith.truncf %181 : vector<8x8xf32> to vector<8x8xbf16>
    %cst_62 = arith.constant dense<0.000000e+00> : vector<8x8xf32>
    %184 = tpu.matmul %183, %182, %cst_62 {dimension_numbers = #tpu.dot_dimension_numbers<[1], [0], [0], [1], [0, 0, 1, 1], [], []>} : vector<8x8xbf16>, vector<8x8xbf16>, vector<8x8xf32> -> vector<8x8xf32>
    %185 = arith.truncf %184 : vector<8x8xf32> to vector<8x8xbf16>
    %186 = vector.extract_strided_slice %128 {offsets = [0, 24], sizes = [8, 8], strides = [1, 1]} : vector<8x32xbf16> to vector<8x8xbf16>
    %187 = vector.extract_strided_slice %132 {offsets = [0, 24], sizes = [8, 8], strides = [1, 1]} : vector<8x32xbf16> to vector<8x8xbf16>
    %cst_63 = arith.constant dense<0.000000e+00> : vector<8x8xf32>
    %188 = tpu.matmul %186, %187, %cst_63 {dimension_numbers = #tpu.dot_dimension_numbers<[1], [1], [0], [0], [0, 0, 1, 0], [], []>} : vector<8x8xbf16>, vector<8x8xbf16>, vector<8x8xf32> -> vector<8x8xf32>
    %cst_64 = arith.constant dense<0xFF800000> : vector<8xf32>
    %189 = vector.multi_reduction <maximumf>, %188, %cst_64 [1] : vector<8x8xf32> to vector<8xf32>
    %190 = vector.shape_cast %189 : vector<8xf32> to vector<8x1xf32>
    %191 = vector.broadcast %190 : vector<8x1xf32> to vector<8x8xf32>
    %192 = arith.subf %188, %191 : vector<8x8xf32>
    %193 = math.exp %192 : vector<8x8xf32>
    %cst_65 = arith.constant dense<0.000000e+00> : vector<8xf32>
    %194 = vector.multi_reduction <add>, %193, %cst_65 [1] : vector<8x8xf32> to vector<8xf32>
    %195 = vector.shape_cast %194 : vector<8xf32> to vector<8x1xf32>
    %196 = tpu.reciprocal %195 {approx = true} : vector<8x1xf32> -> vector<8x1xf32>
    %197 = vector.broadcast %196 : vector<8x1xf32> to vector<8x8xf32>
    %198 = arith.mulf %193, %197 : vector<8x8xf32>
    %199 = vector.extract_strided_slice %133 {offsets = [0, 24], sizes = [8, 8], strides = [1, 1]} : vector<8x32xbf16> to vector<8x8xbf16>
    %200 = arith.truncf %198 : vector<8x8xf32> to vector<8x8xbf16>
    %cst_66 = arith.constant dense<0.000000e+00> : vector<8x8xf32>
    %201 = tpu.matmul %200, %199, %cst_66 {dimension_numbers = #tpu.dot_dimension_numbers<[1], [0], [0], [1], [0, 0, 1, 1], [], []>} : vector<8x8xbf16>, vector<8x8xbf16>, vector<8x8xf32> -> vector<8x8xf32>
    %202 = arith.truncf %201 : vector<8x8xf32> to vector<8x8xbf16>
    %203 = tpu.concatenate %151, %168, %185, %202 in 1 : vector<8x8xbf16>, vector<8x8xbf16>, vector<8x8xbf16>, vector<8x8xbf16> -> vector<8x32xbf16>
    %cst_67 = arith.constant dense<0.000000e+00> : vector<8x32xf32>
    %204 = tpu.matmul %203, %134, %cst_67 {dimension_numbers = #tpu.dot_dimension_numbers<[1], [0], [0], [1], [0, 0, 1, 1], [], []>} : vector<8x32xbf16>, vector<32x32xbf16>, vector<8x32xf32> -> vector<8x32xf32>
    %205 = arith.addf %124, %204 : vector<8x32xf32>
    %c0_68 = arith.constant 0 : index
    %c0_69 = arith.constant 0 : index
    %206 = vector.load %arg15[%c0_68, %c0_69] : memref<1x32xf32, #tpu.memory_space<vmem>>, vector<1x32xf32>
    %c0_70 = arith.constant 0 : index
    %c0_71 = arith.constant 0 : index
    %207 = vector.load %arg16[%c0_70, %c0_71] : memref<1x32xf32, #tpu.memory_space<vmem>>, vector<1x32xf32>
    %cst_72 = arith.constant dense<0.000000e+00> : vector<8xf32>
    %208 = vector.multi_reduction <add>, %205, %cst_72 [1] : vector<8x32xf32> to vector<8xf32>
    %209 = vector.shape_cast %208 : vector<8xf32> to vector<8x1xf32>
    %cst_73 = arith.constant 3.200000e+01 : f32
    %210 = vector.broadcast %cst_73 : f32 to vector<8x1xf32>
    %211 = arith.divf %209, %210 : vector<8x1xf32>
    %212 = vector.broadcast %211 : vector<8x1xf32> to vector<8x32xf32>
    %213 = arith.subf %205, %212 : vector<8x32xf32>
    %214 = arith.mulf %213, %213 : vector<8x32xf32>
    %cst_74 = arith.constant dense<0.000000e+00> : vector<8xf32>
    %215 = vector.multi_reduction <add>, %214, %cst_74 [1] : vector<8x32xf32> to vector<8xf32>
    %216 = vector.shape_cast %215 : vector<8xf32> to vector<8x1xf32>
    %cst_75 = arith.constant 3.200000e+01 : f32
    %217 = vector.broadcast %cst_75 : f32 to vector<8x1xf32>
    %218 = arith.divf %216, %217 : vector<8x1xf32>
    %219 = vector.broadcast %211 : vector<8x1xf32> to vector<8x32xf32>
    %220 = arith.subf %205, %219 : vector<8x32xf32>
    %cst_76 = arith.constant 9.99999974E-6 : f32
    %221 = vector.broadcast %cst_76 : f32 to vector<8x1xf32>
    %222 = arith.addf %218, %221 : vector<8x1xf32>
    %223 = math.rsqrt %222 : vector<8x1xf32>
    %224 = vector.broadcast %223 : vector<8x1xf32> to vector<8x32xf32>
    %225 = arith.mulf %220, %224 : vector<8x32xf32>
    %226 = vector.broadcast %206 : vector<1x32xf32> to vector<8x32xf32>
    %227 = arith.mulf %225, %226 : vector<8x32xf32>
    %228 = vector.broadcast %207 : vector<1x32xf32> to vector<8x32xf32>
    %229 = arith.addf %227, %228 : vector<8x32xf32>
    %c0_77 = arith.constant 0 : index
    %c0_78 = arith.constant 0 : index
    %230 = vector.load %arg11[%c0_77, %c0_78] : memref<32x64xbf16, #tpu.memory_space<vmem>>, vector<32x64xbf16>
    %231 = arith.truncf %229 : vector<8x32xf32> to vector<8x32xbf16>
    %cst_79 = arith.constant dense<0.000000e+00> : vector<8x64xf32>
    %232 = tpu.matmul %231, %230, %cst_79 {dimension_numbers = #tpu.dot_dimension_numbers<[1], [0], [0], [1], [0, 0, 1, 1], [], []>} : vector<8x32xbf16>, vector<32x64xbf16>, vector<8x64xf32> -> vector<8x64xf32>
    %cst_80 = arith.constant 0.000000e+00 : f32
    %233 = vector.broadcast %cst_80 : f32 to vector<8x64xf32>
    %234 = arith.maximumf %232, %233 : vector<8x64xf32>
    %235 = arith.truncf %234 : vector<8x64xf32> to vector<8x64xbf16>
    %c0_81 = arith.constant 0 : index
    %c0_82 = arith.constant 0 : index
    %236 = vector.load %arg12[%c0_81, %c0_82] : memref<64x32xbf16, #tpu.memory_space<vmem>>, vector<64x32xbf16>
    %cst_83 = arith.constant dense<0.000000e+00> : vector<8x32xf32>
    %237 = tpu.matmul %235, %236, %cst_83 {dimension_numbers = #tpu.dot_dimension_numbers<[1], [0], [0], [1], [0, 0, 1, 1], [], []>} : vector<8x64xbf16>, vector<64x32xbf16>, vector<8x32xf32> -> vector<8x32xf32>
    %238 = arith.addf %229, %237 : vector<8x32xf32>
    %c0_84 = arith.constant 0 : index
    %c0_85 = arith.constant 0 : index
    %239 = vector.load %arg17[%c0_84, %c0_85] : memref<1x32xf32, #tpu.memory_space<vmem>>, vector<1x32xf32>
    %c0_86 = arith.constant 0 : index
    %c0_87 = arith.constant 0 : index
    %240 = vector.load %arg18[%c0_86, %c0_87] : memref<1x32xf32, #tpu.memory_space<vmem>>, vector<1x32xf32>
    %cst_88 = arith.constant dense<0.000000e+00> : vector<8xf32>
    %241 = vector.multi_reduction <add>, %238, %cst_88 [1] : vector<8x32xf32> to vector<8xf32>
    %242 = vector.shape_cast %241 : vector<8xf32> to vector<8x1xf32>
    %cst_89 = arith.constant 3.200000e+01 : f32
    %243 = vector.broadcast %cst_89 : f32 to vector<8x1xf32>
    %244 = arith.divf %242, %243 : vector<8x1xf32>
    %245 = vector.broadcast %244 : vector<8x1xf32> to vector<8x32xf32>
    %246 = arith.subf %238, %245 : vector<8x32xf32>
    %247 = arith.mulf %246, %246 : vector<8x32xf32>
    %cst_90 = arith.constant dense<0.000000e+00> : vector<8xf32>
    %248 = vector.multi_reduction <add>, %247, %cst_90 [1] : vector<8x32xf32> to vector<8xf32>
    %249 = vector.shape_cast %248 : vector<8xf32> to vector<8x1xf32>
    %cst_91 = arith.constant 3.200000e+01 : f32
    %250 = vector.broadcast %cst_91 : f32 to vector<8x1xf32>
    %251 = arith.divf %249, %250 : vector<8x1xf32>
    %252 = vector.broadcast %244 : vector<8x1xf32> to vector<8x32xf32>
    %253 = arith.subf %238, %252 : vector<8x32xf32>
    %cst_92 = arith.constant 9.99999974E-6 : f32
    %254 = vector.broadcast %cst_92 : f32 to vector<8x1xf32>
    %255 = arith.addf %251, %254 : vector<8x1xf32>
    %256 = math.rsqrt %255 : vector<8x1xf32>
    %257 = vector.broadcast %256 : vector<8x1xf32> to vector<8x32xf32>
    %258 = arith.mulf %253, %257 : vector<8x32xf32>
    %259 = vector.broadcast %239 : vector<1x32xf32> to vector<8x32xf32>
    %260 = arith.mulf %258, %259 : vector<8x32xf32>
    %261 = vector.broadcast %240 : vector<1x32xf32> to vector<8x32xf32>
    %262 = arith.addf %260, %261 : vector<8x32xf32>
    %263 = arith.truncf %262 : vector<8x32xf32> to vector<8x32xbf16>
    %264 = vector.shape_cast %263 : vector<8x32xbf16> to vector<1x8x32xbf16>
    %c0_93 = arith.constant 0 : index
    %c0_94 = arith.constant 0 : index
    %c0_95 = arith.constant 0 : index
    %265 = vector.load %arg19[%c0_93, %c0_94, %c0_95] : memref<1x8x32xbf16, #tpu.memory_space<vmem>>, vector<1x8x32xbf16>
    tpu.vector_store %arg19[%c0_93, %c0_94, %c0_95], %264 {strides = array<i32>} : memref<1x8x32xbf16, #tpu.memory_space<vmem>>, vector<1x8x32xbf16>,
    return
  }
  func.func @transform_0(%arg0: i32, %arg1: i32) -> (i32, i32, i32) {
    %c0_i32 = arith.constant 0 : i32
    %c0_i32_0 = arith.constant 0 : i32
    return %arg0, %arg1, %c0_i32 : i32, i32, i32
  }
  func.func @transform_1(%arg0: i32, %arg1: i32) -> (i32, i32, i32) {
    %c0_i32 = arith.constant 0 : i32
    %c0_i32_0 = arith.constant 0 : i32
    %c0_i32_1 = arith.constant 0 : i32
    return %arg0, %c0_i32, %c0_i32_0 : i32, i32, i32
  }
  func.func @transform_2(%arg0: i32, %arg1: i32) -> (i32, i32, i32) {
    %c0_i32 = arith.constant 0 : i32
    %c0_i32_0 = arith.constant 0 : i32
    %c0_i32_1 = arith.constant 0 : i32
    return %arg0, %c0_i32, %c0_i32_0 : i32, i32, i32
  }
  func.func @transform_3(%arg0: i32, %arg1: i32) -> (i32, i32) {
    %c0_i32 = arith.constant 0 : i32
    %c0_i32_0 = arith.constant 0 : i32
    %c0_i32_1 = arith.constant 0 : i32
    return %c0_i32, %c0_i32_0 : i32, i32
  }
  func.func @transform_4(%arg0: i32, %arg1: i32) -> (i32, i32) {
    %c0_i32 = arith.constant 0 : i32
    %c0_i32_0 = arith.constant 0 : i32
    %c0_i32_1 = arith.constant 0 : i32
    return %c0_i32, %c0_i32_0 : i32, i32
  }
  func.func @transform_5(%arg0: i32, %arg1: i32) -> (i32, i32) {
    %c0_i32 = arith.constant 0 : i32
    %c0_i32_0 = arith.constant 0 : i32
    %c0_i32_1 = arith.constant 0 : i32
    return %c0_i32, %c0_i32_0 : i32, i32
  }
  func.func @transform_6(%arg0: i32, %arg1: i32) -> (i32, i32) {
    %c0_i32 = arith.constant 0 : i32
    %c0_i32_0 = arith.constant 0 : i32
    %c0_i32_1 = arith.constant 0 : i32
    return %c0_i32, %c0_i32_0 : i32, i32
  }
  func.func @transform_7(%arg0: i32, %arg1: i32) -> (i32, i32) {
    %c0_i32 = arith.constant 0 : i32
    %c0_i32_0 = arith.constant 0 : i32
    %c0_i32_1 = arith.constant 0 : i32
    return %c0_i32, %c0_i32_0 : i32, i32
  }
  func.func @transform_8(%arg0: i32, %arg1: i32) -> (i32, i32) {
    %c0_i32 = arith.constant 0 : i32
    %c0_i32_0 = arith.constant 0 : i32
    %c0_i32_1 = arith.constant 0 : i32
    return %c0_i32, %c0_i32_0 : i32, i32
  }
  func.func @transform_9(%arg0: i32, %arg1: i32) -> (i32, i32) {
    %c0_i32 = arith.constant 0 : i32
    %c0_i32_0 = arith.constant 0 : i32
    %c0_i32_1 = arith.constant 0 : i32
    return %c0_i32, %c0_i32_0 : i32, i32
  }
  func.func @transform_10(%arg0: i32, %arg1: i32) -> (i32, i32) {
    %c0_i32 = arith.constant 0 : i32
    %c0_i32_0 = arith.constant 0 : i32
    %c0_i32_1 = arith.constant 0 : i32
    return %c0_i32, %c0_i32_0 : i32, i32
  }
  func.func @transform_11(%arg0: i32, %arg1: i32) -> (i32, i32) {
    %c0_i32 = arith.constant 0 : i32
    %c0_i32_0 = arith.constant 0 : i32
    %c0_i32_1 = arith.constant 0 : i32
    return %c0_i32, %c0_i32_0 : i32, i32
  }
  func.func @transform_12(%arg0: i32, %arg1: i32) -> (i32, i32) {
    %c0_i32 = arith.constant 0 : i32
    %c0_i32_0 = arith.constant 0 : i32
    %c0_i32_1 = arith.constant 0 : i32
    return %c0_i32, %c0_i32_0 : i32, i32
  }
  func.func @transform_13(%arg0: i32, %arg1: i32) -> (i32, i32) {
    %c0_i32 = arith.constant 0 : i32
    %c0_i32_0 = arith.constant 0 : i32
    %c0_i32_1 = arith.constant 0 : i32
    return %c0_i32, %c0_i32_0 : i32, i32
  }
  func.func @transform_14(%arg0: i32, %arg1: i32) -> (i32, i32) {
    %c0_i32 = arith.constant 0 : i32
    %c0_i32_0 = arith.constant 0 : i32
    %c0_i32_1 = arith.constant 0 : i32
    return %c0_i32, %c0_i32_0 : i32, i32
  }
  func.func @transform_15(%arg0: i32, %arg1: i32) -> (i32, i32) {
    %c0_i32 = arith.constant 0 : i32
    %c0_i32_0 = arith.constant 0 : i32
    %c0_i32_1 = arith.constant 0 : i32
    return %c0_i32, %c0_i32_0 : i32, i32
  }
  func.func @transform_16(%arg0: i32, %arg1: i32) -> (i32, i32) {
    %c0_i32 = arith.constant 0 : i32
    %c0_i32_0 = arith.constant 0 : i32
    %c0_i32_1 = arith.constant 0 : i32
    return %c0_i32, %c0_i32_0 : i32, i32
  }
  func.func @transform_17(%arg0: i32, %arg1: i32) -> (i32, i32, i32) {
    %c0_i32 = arith.constant 0 : i32
    %c0_i32_0 = arith.constant 0 : i32
    return %arg0, %arg1, %c0_i32 : i32, i32, i32
  }
}

</mosaic_0001>

<bundles_post_ra>
// kernel: tpu_custom_call.1
= control target key start
LH: loop header
LB: loop body
LE: loop exit
PB: predicated region body
PF: predicated region fallthrough
CT: control target
= control target key end

     0   :  { %s2938_s0 = inlined_call_operand.vmem [shape: f32[2,8,32], index: 0, kind: input, shape index: {}]   ;;  %s2939_s1 = inlined_call_operand.vmem [shape: f32[2,8,32], index: 1, kind: input, shape index: {}]   ;;  %s2940_s2 = inlined_call_operand.hbm [shape: bf16[2,8,32], index: 2, kind: input, shape index: {}]   ;;  %s2941_s3 = inlined_call_operand.vmem [shape: bf16[32,32], index: 3, kind: input, shape index: {}]   ;;  %s2942_s4 = inlined_call_operand.hbm [shape: bf16[32,64], index: 4, kind: input, shape index: {}]   ;;  %s2943_s5 = inlined_call_operand.hbm [shape: bf16[32,32], index: 5, kind: input, shape index: {}]   ;;  %s2944_s6 = inlined_call_operand.hbm [shape: bf16[32,32], index: 6, kind: input, shape index: {}]   ;;  %s2945_s7 = inlined_call_operand.hbm [shape: bf16[32,64], index: 7, kind: input, shape index: {}]   ;;  %s2946_s8 = inlined_call_operand.hbm [shape: bf16[32,32], index: 8, kind: input, shape index: {}]   ;;  %s2947_s9 = inlined_call_operand.hbm [shape: bf16[32,64], index: 9, kind: input, shape index: {}]   ;;  %s2948_s10 = inlined_call_operand.vmem [shape: bf16[64,32], index: 10, kind: input, shape index: {}]   ;;  %s2949_s11 = inlined_call_operand.vmem [shape: f32[1,32], index: 11, kind: input, shape index: {}]   ;;  %s2950_s12 = inlined_call_operand.vmem [shape: f32[1,32], index: 12, kind: input, shape index: {}]   ;;  %s2951_s13 = inlined_call_operand.vmem [shape: f32[1,32], index: 13, kind: input, shape index: {}]   ;;  %s2952_s14 = inlined_call_operand.vmem [shape: f32[1,32], index: 14, kind: input, shape index: {}]   ;;  %s2953_s15 = inlined_call_operand.vmem [shape: f32[1,32], index: 15, kind: input, shape index: {}]   ;;  %s2954_s16 = inlined_call_operand.vmem [shape: f32[1,32], index: 16, kind: input, shape index: {}]   ;;  %s2955_s17 = inlined_call_operand.hbm [shape: bf16[2,8,32], index: 17, kind: output, shape index: {}]  }
   0x1   :  { %2960 = sst [smem:[#allocation20_spill]] %s2938_s0 }
   0x2   :  { %2961 = sst [smem:[#allocation21_spill]] %s2939_s1 }
   0x3   :  { %2962 = sst [smem:[#allocation22_spill]] %s2940_s2 }
   0x4   :  { %2963 = sst [smem:[#allocation23_spill]] %s2942_s4 }
   0x5   :  { %2964 = sst [smem:[#allocation24_spill]] %s2943_s5 }
   0x6   :  { %2965 = sst [smem:[#allocation25_spill]] %s2944_s6 }
   0x7   :  { %2966 = sst [smem:[#allocation26_spill]] %s2945_s7 }
   0x8   :  { %2967 = sst [smem:[#allocation27_spill]] %s2948_s10 }
   0x9   :  { %2968 = sst [smem:[#allocation28_spill]] %s2951_s13 }
   0xa   :  { %2969 = sst [smem:[#allocation29_spill]] %s2952_s14 }
   0xb   :  { %2970 = sst [smem:[#allocation30_spill]] %s2953_s15 }
   0xc   :  { %2971 = sst [smem:[#allocation31_spill]] %s2954_s16 }
   0xd   :  { %2972 = sst [smem:[#allocation32_spill]] %s2955_s17 }
   0xe   :  { %22 = vsyncpa [#allocation3], 0 }
   0xf   :  { %24 = vsyncpa [#allocation3 + $0x1], 0 }
  0x10   :  { %25 = vsyncpa [#allocation6], 0 }
  0x11   :  { %26 = vsyncpa [#allocation9], 0 }
  0x12   :  { %27 = vsyncpa [#allocation12], 0 }
  0x13   :  { %28 = vsyncpa [#allocation4], 0 }
  0x14   :  { %30 = vsyncpa [#allocation4 + $0x1], 0  ;;  %s2556_s24 = smov 0   ;;  %s2558_s25 = smov 0  }
  0x15   :  { %s2560_s26 = smov 0   ;;  %s2562_s27 = smov 0  }
  0x16   :  { %s2564_s28 = smov 0   ;;  %s2566_s29 = smov 0  }
  0x17 LB: > { %s2956_s0 = sadd.s32 4294967295, %s2444_s29   ;;  %p1818_p0 = scmp.ge.s32.totalorder %s2444_s29, 1  ;;  %s2444_s29 = sphi %s2566_s29, %s36_s29   ;;  %s2440_s28 = sphi %s2564_s28, %s2998_s28   ;;  %s2436_s27 = sphi %s2562_s27, %s2997_s27   ;;  %s2432_s26 = sphi %s2560_s26, %s2996_s26   ;;  %s2428_s25 = sphi %s2558_s25, %s2995_s25   ;;  %s2424_s24 = sphi %s2556_s24, %s2994_s24  }
  0x18   : > { %p2590_p1 = scmp.eq.s32.totalorder %s2956_s0, 0  ;;  %p455_p2 = scmp.lt.s32.totalorder %s2444_s29, 3 }
  0x19   : > { %s2974_s4 = sld [smem:[#allocation23_spill]]  ;;  %s2446_s21 = smov [#allocation5]  }
  0x1a   : > { %p2598_p3 = pnand %p1818_p0, %p455_p2  ;;  %s471_s22 = sshll.u32 %s2446_s21, 4  ;;  %s472_s22 = int_to_ptr.vmem [resolvable:$true] %s471_s22 }
  0x1b   : > { %p1825_p6 = scmp.ge.s32.totalorder %s2444_s29, 2  ;;  %s2977_s6 = sld [smem:[#allocation25_spill]] }
  0x1c   : > { %p1985_p4 = pneg %p2598_p3  ;;  %s2448_s17 = smov 4  }
  0x1d   : > { %s2449_s21 = smov [#allocation8]   ;;  %s525_s13 = sshll.u32 %s2946_s8, 4  ;;  %s526_s13 = int_to_ptr.hbm [resolvable:$true] %s525_s13 }
  0x1e   : > { %p2606_p5 = pnand %p1985_p4, %p2590_p1  ;;  %s499_s16 = sshll.u32 %s2449_s21, 4  ;;  %s500_s16 = int_to_ptr.vmem [resolvable:$true] %s499_s16 }
  0x1f   : > { %s469_s1 = sshll.u32 %s2974_s4, 4  ;;  %s2447_s4 = smov 64   ;;  %s470_s1 = int_to_ptr.hbm [resolvable:$true] %s469_s1 }
  0x20   : > { %1988 = dma.hbm_to_vmem [thread:$0]  (!%p2606_p5), %s470_s1, 256, %s472_s22, [#allocation6], %s2447_s4, %s2447_s4, %s2448_s17  }
  0x21   : > { %s497_s0 = sshll.u32 %s2977_s6, 4  ;;  %s2978_s5 = sld [smem:[#allocation24_spill]]  ;;  %s498_s0 = int_to_ptr.hbm [resolvable:$true] %s497_s0 }
  0x22   : > { %1994 = dma.hbm_to_vmem [thread:$0]  (!%p2606_p5), %s498_s0, 256, %s500_s16, [#allocation9], %s2447_s4, %s2447_s4, %s2448_s17  }
  0x23   : > { %s2450_s10 = smov [#allocation11]   ;;  %s2451_s14 = smov [#allocation7]  }
  0x24   : > { %s527_s1 = sshll.u32 %s2450_s10, 4  ;;  %s485_s15 = sshll.u32 %s2451_s14, 4  ;;  %s528_s1 = int_to_ptr.vmem [resolvable:$true] %s527_s1  ;;  %s486_s15 = int_to_ptr.vmem [resolvable:$true] %s485_s15 }
  0x25   : > { %2000 = dma.hbm_to_vmem [thread:$0]  (!%p2606_p5), %s526_s13, 256, %s528_s1, [#allocation12], %s2447_s4, %s2447_s4, %s2448_s17  }
  0x26   : > { %s2979_s7 = sld [smem:[#allocation26_spill]]  ;;  %s539_s21 = sshll.u32 %s2947_s9, 4  ;;  %s540_s21 = int_to_ptr.hbm [resolvable:$true] %s539_s21 }
  0x27   : > { %s483_s6 = sshll.u32 %s2978_s5, 4  ;;  %s2452_s18 = smov [#allocation10]   ;;  %s484_s6 = int_to_ptr.hbm [resolvable:$true] %s483_s6 }
  0x28   : > { %1991 = dma.hbm_to_vmem [thread:$0]  (!%p2606_p5), %s484_s6, 256, %s486_s15, [#allocation6], %s2447_s4, %s2447_s4, %s2448_s17  }
  0x29   : > { %s513_s19 = sshll.u32 %s2452_s18, 4  ;;  %s2453_s6 = smov [#allocation13]   ;;  %s514_s19 = int_to_ptr.vmem [resolvable:$true] %s513_s19 }
  0x2a   : > { %s541_s1 = sshll.u32 %s2453_s6, 4  ;;  %s48_s14 = sadd.s32 1, %s2440_s28  ;;  %s542_s1 = int_to_ptr.vmem [resolvable:$true] %s541_s1 }
  0x2b   : > { %2003 = dma.hbm_to_vmem [thread:$0]  (!%p2606_p5), %s540_s21, 256, %s542_s1, [#allocation12], %s2447_s4, %s2447_s4, %s2448_s17  }
  0x2c   : > { %s511_s0 = sshll.u32 %s2979_s7, 4  ;;  %s1817_s15 = sadd.s32 4294967294, %s2444_s29   ;;  %s512_s0 = int_to_ptr.hbm [resolvable:$true] %s511_s0 }
  0x2d   : > { %1997 = dma.hbm_to_vmem [thread:$0]  (!%p2606_p5), %s512_s0, 256, %s514_s19, [#allocation9], %s2447_s4, %s2447_s4, %s2448_s17  }
  0x2e   : > { %p50_p7 = scmp.ge.s32.totalorder %s48_s14, 2  ;;  %s109_s22 = sadd.s32 1, %s2432_s26 }
  0x2f   : > { %p116_p8 = scmp.ne.s32.totalorder %s2432_s26, %s2428_s25  ;;  %p117_p9 = scmp.eq.s32.totalorder %s2444_s29, 0 }
  0x30   : > { %s3000_s14 = smov (%p50_p7, %s48_s14), 0  ;;  %p122_p10 = scmp.ne.s32.totalorder %s2428_s25, %s2424_s24 }
  0x31   : > { %s106_s16 = ssub.s32 %s2440_s28, %s3000_s14  ;;  %s2980_s23 = sadd.s32 4294967295, %s2444_s29  }
  0x32   : > { %p442_p11 = scmp.eq.s32.totalorder %s2980_s23, 1  ;;  %p107_p12 = scmp.eq.s32.totalorder %s106_s16, 0 }
  0x33   : > { %p2672_p13 = por %p2590_p1, %p122_p10  ;;  %p448_p2 = scmp.eq.s32.totalorder %s1817_s15, 1 }
  0x34   : > { %p2676_p0 = por %p442_p11, %p116_p8  ;;  %p118_p4 = por %p117_p9, %p116_p8 }
  0x35   : > { %s2681_s0 = scalar_select %p107_p12, %s2432_s26, %s109_s22  }
  0x36   : > { %p2683_p5 = por %p448_p2, %p122_p10  ;;  %s593_s13 = sand.u32 1, %s2432_s26  }
  0x37   : > { %s1827_s21 = sshll.u32 %s2440_s28, 2  ;;  %p2018_p7 = scmp.lt.s32.totalorder %s2444_s29, 2 }
  0x38   : > { %s1826_s18 = sshll.u32 %s593_s13, 2  ;;  %s2984_s2 = sld [smem:[#allocation22_spill]] }
  0x39   : > { %s597_s23 = scalar_lea.vmem [#allocation2], %s1826_s18  ;;  %p2005_p11 = pnand %p2018_p7, %p118_p4 }
  0x3a   : > { %s605_s5 = sshll.u32 %s597_s23, 4  ;;  %s594_s15 = scalar_lea.sflag [#allocation3], %s593_s13  ;;  %s606_s5 = int_to_ptr.vmem [resolvable:$true] %s605_s5 }
  0x3b   : > { %s2696_s22 = sand.u32 (!%p2598_p3), 1, %s2428_s25  }
  0x3c   : > { %614 = sbr.rel (%p2598_p3) target bundleno = 3530 (0xdca), region = 88  ;;  %s2959_s19 = sshll.u32 (!%p2598_p3), %s2696_s22, 2 }
  0x3d   : > { %s2702_s18 = scalar_lea.vmem (!%p2598_p3), [#allocation2], %s2959_s19 }
  0x3e   : > { %s601_s1 = scalar_lea.hbm %s2984_s2, %s1827_s21  ;;  %s617_s21 = scalar_lea.sflag (!%p2598_p3), [#allocation3], %s2696_s22 }
  0x3f   : > { %s603_s16 = sshll.u32 %s601_s1, 4  ;;  %s604_s16 = int_to_ptr.hbm [resolvable:$true] %s603_s16 }
  0x40   : > { %2007 = dma.hbm_to_vmem [thread:$0]  (!%p2005_p11), %s604_s16, 64, %s606_s5, %s594_s15  }
  0x41   : > { %2403 = dma.done.wait (%p2672_p13), %s617_s21, 64  }
  0x42   : > { %2405 = vsyncadd (%p2672_p13), %s617_s21, 4294967232 }
  0x43   : > { %2407 = dma.done.wait (%p2590_p1), [#allocation6], 512  }
  0x44   : > { %2409 = vsyncadd (%p2590_p1), [#allocation6], 4294966784 }
  0x45   : > { %2411 = dma.done.wait (%p2590_p1), [#allocation9], 512  }
  0x46   : > { %2413 = vsyncadd (%p2590_p1), [#allocation9], 4294966784 }
  0x47   : > { %2415 = dma.done.wait (%p2590_p1), [#allocation12], 512  }
  0x48   : > { %2417 = vsyncadd (%p2590_p1), [#allocation12], 4294966784  ;;  %p713_p3 = scmp.lt.s32.totalorder %s2436_s27, 1  ;;  %s2985_s6 = sld [smem:[#allocation20_spill]]  ;;  %v1940_v0 = vld [vmem:[%s2941_s3 + $0x8] sm:$0xff]  ;;  %v1942_v1 = vld [vmem:[#allocation5 + $0x8] sm:$0xff]  ;;  %v729_v25 = vlaneseq }
  0x49   : > { %s2986_s15 = sld [smem:[#allocation21_spill]]  ;;  %v1939_v2 = vld [vmem:[%s2941_s3] sm:$0xff]  ;;  %v1941_v3 = vld [vmem:[#allocation5] sm:$0xff]  ;;  %764 = vmatpush.bf16.msra.mxu0 %v1940_v0  ;;  %798 = vmatpush.bf16.msra.mxu1 %v1942_v1  ;;  %vm754_vm0 = vcmask 261120   ;;  %vm810_vm1 = vcmask 64512   ;;  %s2454_s2 = smov 96  }
  0x4a   : > { %s714_s5 = scalar_select %p713_p3, %s2436_s27, 1  ;;  %vm850_vm2 = vcmask 1043456   ;;  %v730_v27 = vshrl.u32 %v729_v25, 7  ;;  %v734_v28 = vand.u32 127, %v729_v25  ;;  %v2458_v30 = vmov 0.0  }
  0x4b   : > { %s2455_s7 = smov 120   ;;  %s2456_s19 = smov 112   ;;  %vm1060_vm4 = vcmask 130048   ;;  %vm1063_vm5 = vcmask 195584   ;;  %vm1583_vm13 = vcmask 523264  }
  0x4c   : > { %s1837_s20 = sshll.u32 %s714_s5, 3  ;;  %s2457_s5 = smov 104   ;;  %vm735_vm3 = vcmp.gt.s32.totalorder %v734_v28, %v730_v27 }
  0x4d   : > { %765 = vmatpush.bf16.msra.mxu0 %v1939_v2  ;;  %799 = vmatpush.bf16.msra.mxu1 %v1941_v3  ;;  %v736_v31 = vsel %vm735_vm3, -1e+30, %v2458_v30  ;;  %s2460_s4 = smov 80   ;;  %s2461_s13 = smov 72  }
  0x4e   : > { %s719_s1 = scalar_lea.vmem %s2985_s6, %s1837_s20  ;;  %s2462_s6 = smov 8  }
  0x4f   : > { %s723_s21 = scalar_lea.vmem %s2986_s15, %s1837_s20  ;;  %v2734_v4 = vld [vmem:[%s719_s1] sm:$0xff]  ;;  %s2459_s20 = smov 88  }
  0x50   : > { %v726_v5 = vld [vmem:[%s723_s21] sm:$0xff]  ;;  %v741_v6 = vpack.c.bf16 %v2734_v4, %v2734_v4  ;;  %s2463_s1 = smov 16   ;;  %s2464_s16 = smov 24  }
  0x51   : > { %v776_v7 = vpack.c.bf16 %v726_v5, %v726_v5  ;;  %s2989_s23 = sld [smem:[#allocation29_spill]]  ;;  %s1936_s30 = sshll.u32 %s2436_s27, 2 }
  0x52   : > { %1847 = vmatmul.msk.bf16.vlgmr.msra.gmra.mxu0 %vm754_vm0, %v741_v6 }
  0x53   : > { %1856 = vmatmul.msk.bf16.vlgmr.msra.gmra.mxu1 %vm754_vm0, %v776_v7 }
  0xcf   : > { %v767_v8 = vpop.f32.mrf.mxu0 }
  0xd0   : > { %v801_v9 = vpop.f32.mrf.mxu1  ;;  %v771_v10 = vpack.c.bf16 %v767_v8, %v767_v8 }
  0xd1   : > { %v805_v11 = vpack.c.bf16 %v801_v9, %v801_v9 }
  0xd2   : > { %v869_v12 = vunpack.c.l.b16 %v771_v10 }
  0xd3   : > { %v843_v13 = vunpack.c.l.b16 %v805_v11  ;;  %v815_v14 = vsel %vm810_vm1, %v805_v11, 0 }
  0xd4   : > { %824 = vmatpush.bf16.xpose.msra.mxu2 %v815_v14  ;;  %v870_v15 = vpack.c.b16 %v869_v12, %v869_v12 }
  0xd5   : > { %v2741_v16 = vpack.c.b16 %v843_v13, %v843_v13 }
  0xd6   : > { %871 = vrot.lane.b32.xlu2 %v870_v15, %s2455_s7 }
  0xd7   : > { %845 = vrot.lane.b32.xlu1 %v2741_v16, %s2454_s2  ;;  %v769_v17 = vpop.f32.mrf.mxu0 }
  0xd8   : > { %v803_v18 = vpop.f32.mrf.mxu1 }
  0xdb   : > { %1857 = vmatmul.msk.bf16.vlgmr.msra.gmra.mxu2 %vm810_vm1, %v771_v10 }
  0xde   : > { %930 = vrot.lane.b32.xlu2 %v2741_v16, %s2456_s19 }
  0xdf   : > { %873 = vrot.lane.b32.xlu1 %v2741_v16, %s2455_s7 }
  0xe6   : > { %985 = vrot.lane.b32.xlu2 %v870_v15, %s2457_s5 }
  0xe7   : > { %928 = vrot.lane.b32.xlu1 %v870_v15, %s2456_s19 }
 0x130   : > { %v872_v19 = vpop.permute.xlu2 %871 }
 0x138   : > { %v931_v20 = vpop.permute.xlu2 %930 }
 0x139   : > { %v936_v21 = vsel %vm810_vm1, %v931_v20, 0 }
 0x13a   : > { %945 = vmatpush.bf16.xpose.msrb.mxu1 %v936_v21 }
 0x140   : > { %v986_v45 = vpop.permute.xlu2 %985 }
 0x149   : > { %v846_v22 = vpop.permute.xlu1 %845 }
 0x14a   : > { %v852_v23 = vsel %vm850_vm2, %v846_v22, 0 }
 0x14b   : > { %861 = vmatpush.bf16.msra.mxu3 %v852_v23 }
 0x151   : > { %v874_v24 = vpop.permute.xlu1 %873 }
 0x152   : > { %v879_v26 = vsel %vm810_vm1, %v874_v24, 0 }
 0x153   : > { %888 = vmatpush.bf16.xpose.msrb.mxu3 %v879_v26 }
 0x159   : > { %v929_v29 = vpop.permute.xlu1 %928 }
 0x15a   : > { %1861 = vmatmul.msk.bf16.vlgmr.msrb.gmra.mxu1 %vm810_vm1, %v929_v29 }
 0x15e   : > { %v826_v32 = vpop.f32.mrf.mxu2 }
 0x15f   : > { %v827_v33 = vadd.f32 %v826_v32, %v736_v31 }
 0x161   : > { %v830_v34 = vsel %vm810_vm1, %v827_v33, -inf }
 0x162   : > { %831 = vmax.xlane.f32.xlu0 %v830_v34 }
 0x166   : > { %v828_v35 = vpop.f32.mrf.mxu2 }
 0x1d5   : > { %v832_v36 = vpop.xlane.xlu0 %831 }
 0x1d6   : > { %v833_v37 = vsub.f32 %v827_v33, %v832_v36 }
 0x1d7   : > { %v947_v38 = vpop.f32.mrf.mxu1 }
 0x1d8   : > { %v834_v39 = vmul.f32 1.442695, %v833_v37  ;;  %v948_v40 = vadd.f32 %v947_v38, %v736_v31 }
 0x1da   : > { %2100 = vpow2.f32 %v834_v39  ;;  %v951_v41 = vsel %vm810_vm1, %v948_v40, -inf }
 0x1db   : > { %952 = vmax.xlane.f32.xlu2 %v951_v41 }
 0x1df   : > { %v949_v42 = vpop.f32.mrf.mxu1 }
 0x1e0   : > { %v2101_v43 = vpop.eup %2100 }
 0x1e1   : > { %v836_v44 = vsel %vm810_vm1, %v2101_v43, 0.0 }
 0x1e2   : > { %837 = vadd.xlane.f32.xlu0 %v836_v44 }
 0x1f6   : > { %987 = vrot.lane.b32.xlu0 %v2741_v16, %s2457_s5 }
 0x24e   : > { %v953_v46 = vpop.xlane.xlu2 %952 }
 0x24f   : > { %v954_v47 = vsub.f32 %v948_v40, %v953_v46 }
 0x251   : > { %v955_v48 = vmul.f32 1.442695, %v954_v47  ;;  %v1944_v47 = vld [vmem:[#allocation7 + $0x8] sm:$0xff] }
 0x252   : > { %1086 = vmatpush.bf16.msra.mxu1 %v1944_v47 }
 0x253   : > { %2102 = vpow2.f32 %v955_v48  ;;  %v1943_v48 = vld [vmem:[#allocation7] sm:$0xff] }
 0x255   : > { %v838_v49 = vpop.xlane.xlu0 %837 }
 0x256   : > { %2104 = vrcp.f32 %v838_v49  ;;  %1087 = vmatpush.bf16.msra.mxu1 %v1943_v48 }
 0x259   : > { %v2103_v50 = vpop.eup %2102 }
 0x25a   : > { %v957_v51 = vsel %vm810_vm1, %v2103_v50, 0.0 }
 0x25b   : > { %958 = vadd.xlane.f32.xlu2 %v957_v51 }
 0x25c   : > { %v2105_v52 = vpop.eup %2104 }
 0x25d   : > { %v840_v53 = vmul.f32 %v2105_v52, %v2101_v43 }
 0x25f   : > { %v841_v54 = vpack.c.bf16 %v840_v53, %v840_v53 }
 0x261   : > { %1858 = vmatmul.msk.bf16.vlgmr.msra.gmra.mxu3 %vm810_vm1, %v841_v54 }
 0x268   : > { %v988_v55 = vpop.permute.xlu0 %987 }
 0x269   : > { %v993_v56 = vsel %vm810_vm1, %v988_v55, 0 }
 0x26a   : > { %1002 = vmatpush.bf16.xpose.msra.mxu3 %v993_v56 }
 0x271   : > { %1859 = vmatmul.msk.bf16.vlgmr.msrb.gmra.mxu3 %vm810_vm1, %v872_v19 }
 0x281   : > { %1863 = vmatmul.msk.bf16.vlgmr.msra.gmra.mxu3 %vm810_vm1, %v986_v45 }
 0x2ce   : > { %v959_v17 = vpop.xlane.xlu2 %958 }
 0x2e4   : > { %v2767_v57 = vpop.f32.mrf.mxu3 }
 0x2ec   : > { %v865_v58 = vpop.f32.mrf.mxu3 }
 0x2f4   : > { %v890_v59 = vpop.f32.mrf.mxu3 }
 0x2f5   : > { %v891_v60 = vadd.f32 %v890_v59, %v736_v31 }
 0x2f7   : > { %v894_v61 = vsel %vm810_vm1, %v891_v60, -inf }
 0x2f8   : > { %895 = vmax.xlane.f32.xlu1 %v894_v61 }
 0x2fc   : > { %v892_v62 = vpop.f32.mrf.mxu3 }
 0x304   : > { %v1004_v63 = vpop.f32.mrf.mxu3 }
 0x305   : > { %v1005_v0 = vadd.f32 %v1004_v63, %v736_v31 }
 0x307   : > { %v1008_v1 = vsel %vm810_vm1, %v1005_v0, -inf }
 0x308   : > { %1009 = vmax.xlane.f32.xlu0 %v1008_v1 }
 0x30c   : > { %v1006_v2 = vpop.f32.mrf.mxu3 }
 0x311   : > { %906 = vrot.lane.b32.xlu1 %v2741_v16, %s2459_s20 }
 0x36b   : > { %v896_v3 = vpop.xlane.xlu1 %895 }
 0x36c   : > { %v897_v5 = vsub.f32 %v891_v60, %v896_v3 }
 0x36e   : > { %v898_v6 = vmul.f32 1.442695, %v897_v5 }
 0x370   : > { %2106 = vpow2.f32 %v898_v6 }
 0x376   : > { %v2107_v7 = vpop.eup %2106 }
 0x377   : > { %v900_v8 = vsel %vm810_vm1, %v2107_v7, 0.0 }
 0x378   : > { %901 = vadd.xlane.f32.xlu2 %v900_v8  ;;  %v1948_v8 = vld [vmem:[#allocation10 + $0x8] sm:$0xff] }
 0x379   : > { %1192 = vmatpush.bf16.msrb.mxu3 %v1948_v8 }
 0x37b   : > { %v1010_v9 = vpop.xlane.xlu0 %1009 }
 0x37c   : > { %v1011_v10 = vsub.f32 %v1005_v0, %v1010_v9  ;;  %v1947_v9 = vld [vmem:[#allocation10] sm:$0xff] }
 0x37d   : > { %1193 = vmatpush.bf16.msrb.mxu3 %v1947_v9 }
 0x37e   : > { %v1012_v11 = vmul.f32 1.442695, %v1011_v10  ;;  %v727_v10 = vld [vmem:[%s2702_s18] sm:$0xf] }
 0x380   : > { %2108 = vpow2.f32 %v1012_v11  ;;  %1891 = vmatmul.msk.bf16.vlgmr.msrb.gmra.mxu3 %vm754_vm0, %v727_v10  ;;  %v1946_v11 = vld [vmem:[#allocation8 + $0x8] sm:$0xff] }
 0x381   : > { %2110 = vrcp.f32 %v959_v17 }
 0x383   : > { %v907_v12 = vpop.permute.xlu1 %906 }
 0x384   : > { %v912_v13 = vsel %vm850_vm2, %v907_v12, 0  ;;  %v1945_v12 = vld [vmem:[#allocation8] sm:$0xff] }
 0x385   : > { %921 = vmatpush.bf16.msrb.mxu0 %v912_v13 }
 0x386   : > { %v2109_v14 = vpop.eup %2108 }
 0x387   : > { %v1014_v15 = vsel %vm810_vm1, %v2109_v14, 0.0  ;;  %v2111_v19 = vpop.eup %2110 }
 0x388   : > { %1015 = vadd.xlane.f32.xlu0 %v1014_v15  ;;  %v961_v21 = vmul.f32 %v2111_v19, %v2103_v50  ;;  %v867_v50 = vpack.c.bf16 %v2767_v57, %v2767_v57  ;;  %v2465_v57 = vmov 32.0  }
 0x38a   : > { %v962_v26 = vpack.c.bf16 %v961_v21, %v961_v21 }
 0x390   : > { %963 = vrot.lane.b32.xlu2 %v2741_v16, %s2460_s4 }
 0x39c   : > { %1020 = vrot.lane.b32.xlu0 %v2741_v16, %s2461_s13 }
 0x3eb   : > { %v902_v18 = vpop.xlane.xlu2 %901 }
 0x3ec   : > { %2112 = vrcp.f32 %v902_v18 }
 0x3f2   : > { %v2113_v20 = vpop.eup %2112 }
 0x3f3   : > { %v904_v22 = vmul.f32 %v2113_v20, %v2107_v7  ;;  %v964_v23 = vpop.permute.xlu2 %963 }
 0x3f4   : > { %v969_v24 = vsel %vm850_vm2, %v964_v23, 0  ;;  %v2094_v23 = vld [vmem:[%s2949_s11] ss:$0 sm:$0xff] }
 0x3f5   : > { %978 = vmatpush.bf16.msrb.mxu2 %v969_v24  ;;  %v905_v25 = vpack.c.bf16 %v904_v22, %v904_v22 }
 0x3f7   : > { %1860 = vmatmul.msk.bf16.vlgmr.msrb.gmra.mxu0 %vm810_vm1, %v905_v25  ;;  %v2095_v25 = vld [vmem:[%s2950_s12] ss:$0 sm:$0xff] }
 0x3f8   : > { %1862 = vmatmul.msk.bf16.vlgmr.msrb.gmra.mxu2 %vm810_vm1, %v962_v26 }
 0x3f9   : > { %1159 = vmatpush.bf16.msra.mxu2 %v1946_v11 }
 0x3fb   : > { %v1016_v27 = vpop.xlane.xlu0 %1015 }
 0x3fc   : > { %2114 = vrcp.f32 %v1016_v27 }
 0x3fd   : > { %2116 = vrcp.f32 %v2465_v57  ;;  %1160 = vmatpush.bf16.msra.mxu2 %v1945_v12 }
 0x402   : > { %v2115_v16 = vpop.eup %2114 }
 0x403   : > { %v1018_v28 = vmul.f32 %v2115_v16, %v2109_v14  ;;  %v2117_v61 = vpop.eup %2116 }
 0x404   : > { %v1100_v62 = vmul.f32 32.0, %v2117_v61  ;;  %vm1104_vm6 = vweird.f32 %v2117_v61 }
 0x405   : > { %v1019_v31 = vpack.c.bf16 %v1018_v28, %v1018_v28 }
 0x406   : > { %v1101_v63 = vsub.f32 1.0, %v1100_v62 }
 0x408   : > { %v1102_v0 = vmul.f32 %v2117_v61, %v1101_v63 }
 0x40a   : > { %v1103_v1 = vadd.f32 %v2117_v61, %v1102_v0 }
 0x40c   : > { %v2796_v2 = vsel %vm1104_vm6, %v2117_v61, %v1103_v1 }
 0x40e   : > { %v1021_v29 = vpop.permute.xlu0 %1020 }
 0x40f   : > { %v1026_v30 = vsel %vm850_vm2, %v1021_v29, 0  ;;  %v1195_v29 = vpop.f32.mrf.mxu3 }
 0x410   : > { %1035 = vmatpush.bf16.msra.mxu0 %v1026_v30  ;;  %v1199_v30 = vpack.c.bf16 %v1195_v29, %v1195_v29 }
 0x413   : > { %1864 = vmatmul.msk.bf16.vlgmr.msra.gmra.mxu0 %vm810_vm1, %v1019_v31  ;;  %v1208_v31 = vsel %vm810_vm1, %v1199_v30, 0 }
 0x414   : > { %1217 = vmatpush.bf16.xpose.msrb.mxu0 %v1208_v31 }
 0x474   : > { %v923_v32 = vpop.f32.mrf.mxu0 }
 0x475   : > { %v927_v33 = vpack.c.bf16 %v923_v32, %v923_v32  ;;  %v1236_v32 = vunpack.c.l.b16 %v1199_v30 }
 0x477   : > { %v1043_v34 = vunpack.c.l.b16 %v927_v33  ;;  %v2815_v33 = vpack.c.b16 %v1236_v32, %v1236_v32 }
 0x479   : > { %v1044_v35 = vpack.c.b16 %v1043_v34, %v1043_v34  ;;  %v1197_v34 = vpop.f32.mrf.mxu3 }
 0x47b   : > { %v980_v36 = vpop.f32.mrf.mxu2  ;;  %1045 = vrot.lane.b32.xlu1 %v1044_v35, %s2462_s6 }
 0x47c   : > { %v984_v37 = vpack.c.bf16 %v980_v36, %v980_v36  ;;  %v925_v38 = vpop.f32.mrf.mxu0 }
 0x47e   : > { %v1048_v39 = vunpack.c.l.b16 %v984_v37 }
 0x480   : > { %v1049_v40 = vpack.c.b16 %v1048_v39, %v1048_v39 }
 0x483   : > { %v982_v41 = vpop.f32.mrf.mxu2  ;;  %1050 = vrot.lane.b32.xlu1 %v1049_v40, %s2463_s1 }
 0x490   : > { %v1037_v42 = vpop.f32.mrf.mxu0 }
 0x491   : > { %v1041_v43 = vpack.c.bf16 %v1037_v42, %v1037_v42 }
 0x493   : > { %v1053_v44 = vunpack.c.l.b16 %v1041_v43 }
 0x495   : > { %v1054_v45 = vpack.c.b16 %v1053_v44, %v1053_v44 }
 0x497   : > { %1055 = vrot.lane.b32.xlu2 %v1054_v45, %s2464_s16 }
 0x498   : > { %v1039_v46 = vpop.f32.mrf.mxu0 }
 0x49f   : > { %1265 = vrot.lane.b32.xlu2 %v2815_v33, %s2455_s7 }
 0x4ed   : > { %v1046_v49 = vpop.permute.xlu1 %1045 }
 0x4ee   : > { %v1059_v51 = vsel %vm810_vm1, %v867_v50, %v1046_v49 }
 0x4f1   : > { %v1056_v53 = vpop.permute.xlu2 %1055 }
 0x4f5   : > { %v1051_v52 = vpop.permute.xlu1 %1050 }
 0x4f6   : > { %v1062_v54 = vsel %vm1060_vm4, %v1059_v51, %v1051_v52 }
 0x4f7   : > { %v1065_v55 = vsel %vm1063_vm5, %v1062_v54, %v1056_v53 }
 0x4f8   : > { %1873 = vmatmul.msk.bf16.vlgmr.msra.gmra.mxu1 %vm754_vm0, %v1065_v55 }
 0x4f9   : > { %v1266_v40 = vpop.permute.xlu2 %1265 }
 0x4fa   : > { %v1271_v41 = vsel %vm810_vm1, %v1266_v40, 0 }
 0x4fb   : > { %1280 = vmatpush.bf16.xpose.msrb.mxu2 %v1271_v41 }
 0x575   : > { %v1089_v56 = vpop.f32.mrf.mxu1 }
 0x576   : > { %v1093_v58 = vadd.f32 %v1089_v56, %v2734_v4 }
 0x578   : > { %v1096_v59 = vsel %vm754_vm0, %v1093_v58, 0.0 }
 0x579   : > { %1097 = vadd.xlane.f32.xlu0 %v1096_v59 }
 0x57d   : > { %v1091_v60 = vpop.f32.mrf.mxu1 }
 0x5ec   : > { %v1098_v3 = vpop.xlane.xlu0 %1097 }
 0x5ed   : > { %v1106_v5 = vmul.f32 %v2796_v2, %v1098_v3 }
 0x5ef   : > { %v1107_v6 = vsub.f32 %v1093_v58, %v1106_v5 }
 0x5f1   : > { %v1108_v4 = vmul.f32 %v1107_v6, %v1107_v6 }
 0x5f3   : > { %v1109_v7 = vsel %vm754_vm0, %v1108_v4, 0.0 }
 0x5f4   : > { %1110 = vadd.xlane.f32.xlu1 %v1109_v7 }
 0x667   : > { %v1111_v13 = vpop.xlane.xlu1 %1110 }
 0x668   : > { %v1112_v14 = vmul.f32 %v1111_v13, %v2796_v2 }
 0x66a   : > { %v1113_v15 = vadd.f32 1e-05, %v1112_v14 }
 0x66c   : > { %2118 = vrsqrt.f32 %v1113_v15  ;;  %vm1120_vm8 = vweird.f32 %v1113_v15 }
 0x672   : > { %v2119_v17 = vpop.eup %2118 }
 0x673   : > { %v1115_v18 = vmul.f32 %v2119_v17, %v1113_v15  ;;  %vm1121_vm7 = vweird.f32 %v2119_v17 }
 0x674   : > { %vm1122_vm9 = vmor %vm1120_vm8, %vm1121_vm7 }
 0x675   : > { %v1116_v19 = vmul.f32 %v2119_v17, %v1115_v18 }
 0x677   : > { %v1117_v20 = vmul.f32 0.5, %v1116_v19 }
 0x679   : > { %v1118_v21 = vsub.f32 1.5, %v1117_v20 }
 0x67b   : > { %v1119_v22 = vmul.f32 %v2119_v17, %v1118_v21 }
 0x67d   : > { %v1123_v24 = vsel %vm1122_vm9, %v2119_v17, %v1119_v22 }
 0x67e   : > { %v1124_v26 = vmul.f32 %v1123_v24, %v1107_v6 }
 0x680   : > { %v1128_v27 = vmul.f32 %v2094_v23, %v1124_v26 }
 0x682   : > { %v2809_v16 = vadd.f32 %v2095_v25, %v1128_v27 }
 0x684   : > { %v1137_v28 = vpack.c.bf16 %v2809_v16, %v2809_v16 }
 0x686   : > { %1882 = vmatmul.msk.bf16.vlgmr.msra.gmra.mxu2 %vm754_vm0, %v1137_v28 }
 0x709   : > { %v1162_v35 = vpop.f32.mrf.mxu2 }
 0x70a   : > { %v1166_v36 = vpack.c.bf16 %v1162_v35, %v1162_v35 }
 0x70c   : > { %v1261_v37 = vunpack.c.l.b16 %v1166_v36  ;;  %1892 = vmatmul.msk.bf16.vlgmr.msrb.gmra.mxu0 %vm810_vm1, %v1166_v36 }
 0x70e   : > { %v1262_v38 = vpack.c.b16 %v1261_v37, %v1261_v37 }
 0x710   : > { %1320 = vrot.lane.b32.xlu0 %v1262_v38, %s2456_s19  ;;  %1263 = vrot.lane.b32.xlu2 %v1262_v38, %s2455_s7  ;;  %s2987_s7 = sld [smem:[#allocation27_spill]] }
 0x711   : > { %v1164_v39 = vpop.f32.mrf.mxu2 }
 0x718   : > { %1379 = vrot.lane.b32.xlu2 %v2815_v33, %s2457_s5 }
 0x720   : > { %1377 = vrot.lane.b32.xlu2 %v1262_v38, %s2457_s5  ;;  %s2990_s5 = sld [smem:[#allocation30_spill]] }
 0x728   : > { %1322 = vrot.lane.b32.xlu2 %v2815_v33, %s2456_s19 }
 0x76a   : > { %v1264_v42 = vpop.permute.xlu2 %1263 }
 0x76b   : > { %1894 = vmatmul.msk.bf16.vlgmr.msrb.gmra.mxu2 %vm810_vm1, %v1264_v42 }
 0x772   : > { %v1380_v43 = vpop.permute.xlu2 %1379 }
 0x773   : > { %v1385_v44 = vsel %vm810_vm1, %v1380_v43, 0 }
 0x774   : > { %1394 = vmatpush.bf16.xpose.msra.mxu2 %v1385_v44 }
 0x77a   : > { %v1378_v45 = vpop.permute.xlu2 %1377 }
 0x77b   : > { %1898 = vmatmul.msk.bf16.vlgmr.msra.gmra.mxu2 %vm810_vm1, %v1378_v45 }
 0x782   : > { %v1323_v46 = vpop.permute.xlu2 %1322  ;;  %v1321_v49 = vpop.permute.xlu0 %1320 }
 0x783   : > { %v1328_v47 = vsel %vm810_vm1, %v1323_v46, 0 }
 0x784   : > { %1337 = vmatpush.bf16.xpose.msra.mxu0 %v1328_v47 }
 0x789   : > { %v1219_v48 = vpop.f32.mrf.mxu0 }
 0x78a   : > { %v1223_v50 = vsel %vm810_vm1, %v1219_v48, -inf }
 0x78b   : > { %1896 = vmatmul.msk.bf16.vlgmr.msra.gmra.mxu0 %vm810_vm1, %v1321_v49  ;;  %1224 = vmax.xlane.f32.xlu2 %v1223_v50 }
 0x791   : > { %v1221_v51 = vpop.f32.mrf.mxu0 }
 0x7a3   : > { %1238 = vrot.lane.b32.xlu2 %v2815_v33, %s2454_s2  ;;  %s1637_s2 = scalar_lea.sflag [#allocation4], %s2696_s22 }
 0x7ab   : > { %1355 = vrot.lane.b32.xlu2 %v2815_v33, %s2460_s4 }
 0x7ee   : > { %v1282_v52 = vpop.f32.mrf.mxu2 }
 0x7ef   : > { %v1286_v3 = vsel %vm810_vm1, %v1282_v52, -inf }
 0x7f6   : > { %v1284_v53 = vpop.f32.mrf.mxu2 }
 0x7fe   : > { %v1396_v54 = vpop.f32.mrf.mxu2  ;;  %v1225_v55 = vpop.xlane.xlu2 %1224 }
 0x7ff   : > { %v1226_v60 = vsub.f32 %v1219_v48, %v1225_v55  ;;  %v1400_v4 = vsel %vm810_vm1, %v1396_v54, -inf }
 0x801   : > { %v1227_v62 = vmul.f32 1.442695, %v1226_v60 }
 0x803   : > { %2120 = vpow2.f32 %v1227_v62 }
 0x806   : > { %v1398_v56 = vpop.f32.mrf.mxu2  ;;  %v1239_v58 = vpop.permute.xlu2 %1238 }
 0x807   : > { %v1244_v59 = vsel %vm850_vm2, %v1239_v58, 0 }
 0x808   : > { %1253 = vmatpush.bf16.msrb.mxu1 %v1244_v59  ;;  %v1339_v57 = vpop.f32.mrf.mxu0 }
 0x809   : > { %v1343_v61 = vsel %vm810_vm1, %v1339_v57, -inf  ;;  %v2121_v5 = vpop.eup %2120 }
 0x80a   : > { %1344 = vmax.xlane.f32.xlu1 %v1343_v61  ;;  %v1229_v6 = vsel %vm810_vm1, %v2121_v5, 0.0  ;;  %v1949_v61 = vld [vmem:[#allocation11] sm:$0xff] }
 0x80e   : > { %v1356_v63 = vpop.permute.xlu2 %1355 }
 0x80f   : > { %v1361_v0 = vsel %vm850_vm2, %v1356_v63, 0 }
 0x810   : > { %v1341_v1 = vpop.f32.mrf.mxu0  ;;  %1370 = vmatpush.bf16.msra.mxu1 %v1361_v0 }
 0x812   : > { %1287 = vmax.xlane.f32.xlu1 %v1286_v3 }
 0x81a   : > { %1230 = vadd.xlane.f32.xlu1 %v1229_v6 }
 0x822   : > { %1401 = vmax.xlane.f32.xlu1 %v1400_v4 }
 0x83b   : > { %1298 = vrot.lane.b32.xlu1 %v2815_v33, %s2459_s20 }
 0x87d   : > { %v1345_v7 = vpop.xlane.xlu1 %1344 }
 0x87e   : > { %v1346_v10 = vsub.f32 %v1339_v57, %v1345_v7  ;;  %v1950_v57 = vld [vmem:[#allocation11 + $0x8] sm:$0xff] }
 0x87f   : > { %1476 = vmatpush.bf16.msrb.mxu0 %v1950_v57 }
 0x880   : > { %v1347_v12 = vmul.f32 1.442695, %v1346_v10 }
 0x883   : > { %1477 = vmatpush.bf16.msrb.mxu0 %v1949_v61 }
 0x885   : > { %v1288_v8 = vpop.xlane.xlu1 %1287 }
 0x886   : > { %v1289_v9 = vsub.f32 %v1282_v52, %v1288_v8 }
 0x888   : > { %v1290_v11 = vmul.f32 1.442695, %v1289_v9 }
 0x88a   : > { %2122 = vpow2.f32 %v1290_v11 }
 0x88d   : > { %v1231_v13 = vpop.xlane.xlu1 %1230 }
 0x88e   : > { %2124 = vrcp.f32 %v1231_v13 }
 0x88f   : > { %2126 = vpow2.f32 %v1347_v12 }
 0x890   : > { %v2123_v14 = vpop.eup %2122 }
 0x891   : > { %v1292_v15 = vsel %vm810_vm1, %v2123_v14, 0.0 }
 0x892   : > { %1293 = vadd.xlane.f32.xlu0 %v1292_v15  ;;  %v1952_v15 = vld [vmem:[#allocation13 + $0x8] sm:$0xff] }
 0x894   : > { %v2125_v17 = vpop.eup %2124 }
 0x895   : > { %v1233_v18 = vmul.f32 %v2125_v17, %v2121_v5  ;;  %v1402_v19 = vpop.xlane.xlu1 %1401  ;;  %v2127_v20 = vpop.eup %2126  ;;  %v1951_v17 = vld [vmem:[#allocation13] sm:$0xff] }
 0x896   : > { %v1403_v21 = vsub.f32 %v1396_v54, %v1402_v19  ;;  %v1349_v24 = vsel %vm810_vm1, %v2127_v20, 0.0 }
 0x897   : > { %v1234_v22 = vpack.c.bf16 %v1233_v18, %v1233_v18 }
 0x898   : > { %v1404_v23 = vmul.f32 1.442695, %v1403_v21 }
 0x899   : > { %1893 = vmatmul.msk.bf16.vlgmr.msrb.gmra.mxu1 %vm810_vm1, %v1234_v22  ;;  %v1954_v22 = vld [vmem:[%s2987_s7 + $0x8] sm:$0xff] }
 0x89a   : > { %2128 = vpow2.f32 %v1404_v23  ;;  %1350 = vadd.xlane.f32.xlu0 %v1349_v24  ;;  %1542 = vmatpush.bf16.msrb.mxu1 %v1952_v15 }
 0x89e   : > { %1543 = vmatpush.bf16.msrb.mxu1 %v1951_v17 }
 0x8a0   : > { %v2129_v25 = vpop.eup %2128 }
 0x8a1   : > { %v1406_v26 = vsel %vm810_vm1, %v2129_v25, 0.0 }
 0x8a2   : > { %1407 = vadd.xlane.f32.xlu1 %v1406_v26 }
 0x8ad   : > { %v1299_v27 = vpop.permute.xlu1 %1298 }
 0x8ae   : > { %v1304_v28 = vsel %vm850_vm2, %v1299_v27, 0  ;;  %1412 = vrot.lane.b32.xlu0 %v2815_v33, %s2461_s13  ;;  %s2991_s13 = sld [smem:[#allocation31_spill]] }
 0x8af   : > { %1313 = vmatpush.bf16.msra.mxu3 %v1304_v28 }
 0x905   : > { %v1294_v29 = vpop.xlane.xlu0 %1293 }
 0x906   : > { %2130 = vrcp.f32 %v1294_v29 }
 0x90c   : > { %v2131_v30 = vpop.eup %2130 }
 0x90d   : > { %v1296_v31 = vmul.f32 %v2131_v30, %v2123_v14  ;;  %v1351_v32 = vpop.xlane.xlu0 %1350 }
 0x90e   : > { %2132 = vrcp.f32 %v1351_v32 }
 0x90f   : > { %v1297_v34 = vpack.c.bf16 %v1296_v31, %v1296_v31  ;;  %v2097_v31 = vld [vmem:[%s2989_s23] ss:$0 sm:$0xff]  ;;  %s2993_s23 = sshll.u32 %s2696_s22, 2 }
 0x910   : > { %s712_s27 = scalar_lea.vmem [#allocation14], %s2993_s23 }
 0x911   : > { %1895 = vmatmul.msk.bf16.vlgmr.msra.gmra.mxu3 %vm810_vm1, %v1297_v34  ;;  %s1650_s15 = sshll.u32 %s712_s27, 4  ;;  %s1651_s15 = int_to_ptr.vmem [resolvable:$true] %s1650_s15 }
 0x914   : > { %v2133_v35 = vpop.eup %2132 }
 0x915   : > { %v1353_v36 = vmul.f32 %v2133_v35, %v2127_v20  ;;  %v1408_v37 = vpop.xlane.xlu1 %1407  ;;  %v1955_v20 = vld [vmem:[%s2987_s7 + $0x10] sm:$0xff] }
 0x916   : > { %2134 = vrcp.f32 %v1408_v37  ;;  %v1255_v38 = vpop.f32.mrf.mxu1  ;;  %v1953_v37 = vld [vmem:[%s2987_s7] sm:$0xff] }
 0x917   : > { %v1354_v39 = vpack.c.bf16 %v1353_v36, %v1353_v36  ;;  %v1259_v63 = vpack.c.bf16 %v1255_v38, %v1255_v38 }
 0x919   : > { %1897 = vmatmul.msk.bf16.vlgmr.msra.gmra.mxu1 %vm810_vm1, %v1354_v39 }
 0x91c   : > { %v2135_v40 = vpop.eup %2134 }
 0x91d   : > { %v1410_v41 = vmul.f32 %v2135_v40, %v2129_v25 }
 0x91e   : > { %v1257_v33 = vpop.f32.mrf.mxu1 }
 0x91f   : > { %v1411_v44 = vpack.c.bf16 %v1410_v41, %v1410_v41 }
 0x920   : > { %v1413_v42 = vpop.permute.xlu0 %1412 }
 0x921   : > { %v1418_v43 = vsel %vm850_vm2, %v1413_v42, 0 }
 0x922   : > { %1427 = vmatpush.bf16.msrb.mxu3 %v1418_v43 }
 0x925   : > { %1899 = vmatmul.msk.bf16.vlgmr.msrb.gmra.mxu3 %vm810_vm1, %v1411_v44 }
 0x994   : > { %v1315_v45 = vpop.f32.mrf.mxu3 }
 0x995   : > { %v1319_v46 = vpack.c.bf16 %v1315_v45, %v1315_v45 }
 0x996   : > { %v1372_v47 = vpop.f32.mrf.mxu1 }
 0x997   : > { %v1435_v48 = vunpack.c.l.b16 %v1319_v46  ;;  %v1376_v50 = vpack.c.bf16 %v1372_v47, %v1372_v47 }
 0x999   : > { %v1436_v49 = vpack.c.b16 %v1435_v48, %v1435_v48  ;;  %v1440_v52 = vunpack.c.l.b16 %v1376_v50 }
 0x99b   : > { %1437 = vrot.lane.b32.xlu2 %v1436_v49, %s2462_s6  ;;  %v1441_v54 = vpack.c.b16 %v1440_v52, %v1440_v52 }
 0x99c   : > { %v1317_v51 = vpop.f32.mrf.mxu3 }
 0x99e   : > { %v1374_v53 = vpop.f32.mrf.mxu1 }
 0x9a3   : > { %1442 = vrot.lane.b32.xlu2 %v1441_v54, %s2463_s1  ;;  %s2988_s1 = sld [smem:[#allocation28_spill]] }
 0x9a8   : > { %v1429_v55 = vpop.f32.mrf.mxu3 }
 0x9a9   : > { %v1433_v56 = vpack.c.bf16 %v1429_v55, %v1429_v55  ;;  %v2096_v29 = vld [vmem:[%s2988_s1] ss:$0 sm:$0xff] }
 0x9ab   : > { %v1445_v58 = vunpack.c.l.b16 %v1433_v56 }
 0x9ad   : > { %v1446_v59 = vpack.c.b16 %v1445_v58, %v1445_v58 }
 0x9af   : > { %1447 = vrot.lane.b32.xlu0 %v1446_v59, %s2464_s16  ;;  %s2992_s16 = sld [smem:[#allocation32_spill]] }
 0x9b0   : > { %v1431_v60 = vpop.f32.mrf.mxu3 }
 0x9b1   : > { %v2098_v60 = vld [vmem:[%s2990_s5] ss:$0 sm:$0xff] }
 0x9b5   : > { %s1648_s18 = scalar_lea.hbm %s2992_s16, %s1936_s30  ;;  %s2370_s4 = scalar_lea.hbm %s2992_s16, 8 }
 0x9b6   : > { %s1652_s21 = sshll.u32 %s1648_s18, 4  ;;  %s1653_s21 = int_to_ptr.hbm [resolvable:$true] %s1652_s21 }
 0x9b7   : > { %s2364_s19 = sshra.s32 %s1653_s21, 4  ;;  %s2365_s19 = int_to_ptr.hbm [resolvable:$true] %s2364_s19 }
 0x9b8   : > { %s2366_s5 = scalar_lea.hbm %s2365_s19, 4  ;;  %p2371_p10 = scmp.lt.s32.totalorder %s2365_s19, %s2992_s16 }
 0x9b9   : > { %p2367_p1 = scmp.ne.s32.totalorder %s2365_s19, %s2366_s5  ;;  %p2372_p12 = scmp.lt.s32.totalorder %s2370_s4, %s2366_s5 }
 0x9bb   : > { %p2368_p8 = pnand %p2367_p1, %p2676_p0  ;;  %p2373_p13 = por %p2372_p12, %p2371_p10 }
 0x9bd   : > { %p2369_p9 = pneg %p2368_p8 }
 0x9bf   : > { %p2374_p2 = pnand %p2373_p13, %p2369_p9 }
 0x9f5   : > { %v1438_v62 = vpop.permute.xlu2 %1437 }
 0x9f6   : > { %v1451_v1 = vsel %vm810_vm1, %v1259_v63, %v1438_v62  ;;  %vm1634_vm1 = vcmask 257024  }
 0x9fd   : > { %v1443_v0 = vpop.permute.xlu2 %1442 }
 0x9fe   : > { %v1453_v3 = vsel %vm1060_vm4, %v1451_v1, %v1443_v0 }
 0xa21   : > { %v1448_v5 = vpop.permute.xlu0 %1447 }
 0xa22   : > { %v1455_v6 = vsel %vm1063_vm5, %v1453_v3, %v1448_v5 }
 0xa23   : > { %1908 = vmatmul.msk.bf16.vlgmr.msrb.gmra.mxu0 %vm754_vm0, %v1455_v6 }
 0xaa0   : > { %v1479_v4 = vpop.f32.mrf.mxu0 }
 0xaa1   : > { %v1483_v7 = vadd.f32 %v1479_v4, %v2809_v16  ;;  %v1956_v16 = vld [vmem:[%s2987_s7 + $0x18] sm:$0xff] }
 0xaa2   : > { %1591 = vmatpush.bf16.msrb.mxu2 %v1956_v16 }
 0xaa3   : > { %v1486_v8 = vsel %vm754_vm0, %v1483_v7, 0.0 }
 0xaa4   : > { %1487 = vadd.xlane.f32.xlu2 %v1486_v8 }
 0xaa6   : > { %1592 = vmatpush.bf16.msrb.mxu2 %v1955_v20 }
 0xaa8   : > { %v1481_v9 = vpop.f32.mrf.mxu0 }
 0xaaa   : > { %1593 = vmatpush.bf16.msrb.mxu2 %v1954_v22 }
 0xaae   : > { %1594 = vmatpush.bf16.msrb.mxu2 %v1953_v37 }
 0xb17   : > { %v1488_v10 = vpop.xlane.xlu2 %1487 }
 0xb18   : > { %v1489_v11 = vmul.f32 %v1488_v10, %v2796_v2 }
 0xb1a   : > { %v1490_v12 = vsub.f32 %v1483_v7, %v1489_v11 }
 0xb1c   : > { %v1491_v13 = vmul.f32 %v1490_v12, %v1490_v12 }
 0xb1e   : > { %v1492_v14 = vsel %vm754_vm0, %v1491_v13, 0.0 }
 0xb1f   : > { %1493 = vadd.xlane.f32.xlu0 %v1492_v14 }
 0xb92   : > { %v1494_v18 = vpop.xlane.xlu0 %1493 }
 0xb93   : > { %v1495_v19 = vmul.f32 %v1494_v18, %v2796_v2 }
 0xb95   : > { %v1496_v21 = vadd.f32 1e-05, %v1495_v19 }
 0xb97   : > { %2136 = vrsqrt.f32 %v1496_v21  ;;  %vm1503_vm11 = vweird.f32 %v1496_v21 }
 0xb9d   : > { %v2137_v23 = vpop.eup %2136 }
 0xb9e   : > { %v1498_v24 = vmul.f32 %v2137_v23, %v1496_v21  ;;  %vm1504_vm10 = vweird.f32 %v2137_v23 }
 0xb9f   : > { %vm1505_vm12 = vmor %vm1503_vm11, %vm1504_vm10 }
 0xba0   : > { %v1499_v25 = vmul.f32 %v2137_v23, %v1498_v24 }
 0xba2   : > { %v1500_v26 = vmul.f32 0.5, %v1499_v25 }
 0xba4   : > { %v1501_v27 = vsub.f32 1.5, %v1500_v26 }
 0xba6   : > { %v1502_v28 = vmul.f32 %v2137_v23, %v1501_v27 }
 0xba8   : > { %v1506_v30 = vsel %vm1505_vm12, %v2137_v23, %v1502_v28 }
 0xba9   : > { %v1507_v32 = vmul.f32 %v1506_v30, %v1490_v12 }
 0xbab   : > { %v1511_v34 = vmul.f32 %v2096_v29, %v1507_v32 }
 0xbad   : > { %v1515_v35 = vadd.f32 %v2097_v31, %v1511_v34 }
 0xbaf   : > { %v1520_v36 = vpack.c.bf16 %v1515_v35, %v1515_v35 }
 0xbb1   : > { %1917 = vmatmul.msk.bf16.vlgmr.msrb.gmra.mxu1 %vm754_vm0, %v1520_v36 }
 0xc2e   : > { %v1545_v38 = vpop.f32.mrf.mxu1 }
 0xc2f   : > { %v1549_v39 = vmax.f32 %v1545_v38, 0.0 }
 0xc31   : > { %v1550_v40 = vpack.c.bf16 %v1549_v39, %v1549_v39 }
 0xc33   : > { %1934 = vmatmul.msk.bf16.vlgmr.msrb.gmra.mxu2 %vm1583_vm13, %v1550_v40 }
 0xc36   : > { %v1547_v33 = vpop.f32.mrf.mxu1 }
 0xcb6   : > { %v1596_v41 = vpop.f32.mrf.mxu2 }
 0xcb7   : > { %v1600_v42 = vadd.f32 %v1596_v41, %v1515_v35 }
 0xcb9   : > { %v1603_v43 = vsel %vm754_vm0, %v1600_v42, 0.0 }
 0xcba   : > { %1604 = vadd.xlane.f32.xlu1 %v1603_v43 }
 0xcbe   : > { %v1598_v44 = vpop.f32.mrf.mxu2 }
 0xd2d   : > { %v1605_v45 = vpop.xlane.xlu1 %1604 }
 0xd2e   : > { %v1606_v46 = vmul.f32 %v1605_v45, %v2796_v2 }
 0xd30   : > { %v1607_v47 = vsub.f32 %v1600_v42, %v1606_v46 }
 0xd32   : > { %v1608_v48 = vmul.f32 %v1607_v47, %v1607_v47 }
 0xd34   : > { %v1609_v49 = vsel %vm754_vm0, %v1608_v48, 0.0 }
 0xd35   : > { %1610 = vadd.xlane.f32.xlu1 %v1609_v49 }
 0xda8   : > { %v1611_v50 = vpop.xlane.xlu1 %1610 }
 0xda9   : > { %v1612_v51 = vmul.f32 %v1611_v50, %v2796_v2  ;;  %v2099_v2 = vld [vmem:[%s2991_s13] ss:$0 sm:$0xff] }
 0xdab   : > { %v1613_v52 = vadd.f32 1e-05, %v1612_v51 }
 0xdad   : > { %2138 = vrsqrt.f32 %v1613_v52  ;;  %vm1620_vm15 = vweird.f32 %v1613_v52 }
 0xdb3   : > { %v2139_v53 = vpop.eup %2138 }
 0xdb4   : > { %v1615_v54 = vmul.f32 %v2139_v53, %v1613_v52  ;;  %vm1621_vm14 = vweird.f32 %v2139_v53 }
 0xdb5   : > { %vm1622_vm0 = vmor %vm1620_vm15, %vm1621_vm14 }
 0xdb6   : > { %v1616_v55 = vmul.f32 %v2139_v53, %v1615_v54 }
 0xdb8   : > { %v1617_v56 = vmul.f32 0.5, %v1616_v55 }
 0xdba   : > { %v1618_v58 = vsub.f32 1.5, %v1617_v56 }
 0xdbc   : > { %v1619_v59 = vmul.f32 %v2139_v53, %v1618_v58 }
 0xdbe   : > { %v1623_v57 = vsel %vm1622_vm0, %v2139_v53, %v1619_v59 }
 0xdbf   : > { %v1624_v61 = vmul.f32 %v1623_v57, %v1607_v47 }
 0xdc1   : > { %v1628_v62 = vmul.f32 %v2098_v60, %v1624_v61 }
 0xdc3   : > { %v1632_v63 = vadd.f32 %v2099_v2, %v1628_v62 }
 0xdc5   : > { %v1633_v0 = vpack.c.bf16 %v1632_v63, %v1632_v63 }
 0xdc7   : > { %1635 = vst.msk [vmem:[%s712_s27] sm:$0xf] %vm1634_vm1, %v1633_v0 }
 0xdc8   : > { %2377 = shalt.err (!%p2374_p2)
}
 0xdc9   : > { %1983 = dma.vmem_to_hbm [thread:$0]  (%p2676_p0), %s1651_s15, 64, %s1653_s21, %s1637_s2  }
 0xdca PF: > { %s1664_s22 = sand.u32 1, %s2424_s24   ;;  %p2009_p4 = pnand %p1825_p6, %p2683_p5 }
 0xdcb   : > { %s1665_s1 = scalar_lea.sflag [#allocation4], %s1664_s22 }
 0xdcc   : > { %p2010_p7 = pneg %p2009_p4 }
 0xdce   : > { %2419 = dma.done.wait (%p2010_p7), %s1665_s1, 64  }
 0xdcf   : > { %2421 = vsyncadd (%p2010_p7), %s1665_s1, 4294967232  ;;  %s36_s29 = sadd.s32 1, %s2444_s29   ;;  %s2994_s24 = smov %s2428_s25 }
 0xdd0   : > { %p33_p11 = scmp.ge.s32.totalorder %s36_s29, 4   ;;  %s2995_s25 = smov %s2432_s26 }
 0xdd1   : > { %s2996_s26 = smov %s2681_s0  ;;  %s2997_s27 = smov %s2440_s28 }
 0xdd2   : > { %s2998_s28 = smov %s3000_s14  ;;  %35 = sbr.rel (!%p33_p11) target bundleno = 23 (0x17), region = 163 }
 0xdd7   :  { %1671 = vsyncpa [#allocation3], 1 }
 0xdd8   :  { %1673 = vsyncpa [#allocation3 + $0x1], 1 }
 0xdd9   :  { %1674 = vsyncpa [#allocation6], 1 }
 0xdda   :  { %1675 = vsyncpa [#allocation9], 1 }
 0xddb   :  { %1676 = vsyncpa [#allocation12], 1 }
 0xddc   :  { %1677 = vsyncpa [#allocation4], 1 }
 0xddd   :  { %1679 = vsyncpa [#allocation4 + $0x1], 1 }

</bundles_post_ra>
